<compile_context>
chip_gen: v7x
topology: tpu7x:2x2x1
jax: 0.10.0
libtpu: 0.0.40
codegen_flags: <defaults>
</compile_context>

<pallas_src>
import functools

import jax
import jax.numpy as jnp
from jax.experimental import pallas as pl
from jax.experimental.pallas import tpu as pltpu

EPS = 1e-5


# ----------------------------------------------------------------------------
# Fused Pallas kernel
# ----------------------------------------------------------------------------
def _dsconv_kernel(x_ref, wdw_ref, dwsh_ref, wpw_ref, pwsh_ref, o_ref,
                   xpad_ref, *, ksize, pad, col_off, th):
    """relu(BN(pw1x1( relu(BN(dw_kxk(x))) ))) for one batch element.

    x_ref    : (1, Hin, Win, Cin)  un-padded input block
    wdw_ref  : (k*k, Cin)          depthwise taps, BN scale folded in
                                   (row-major tap index t = dy*k + dx)
    dwsh_ref : (1, Cin)            folded (conv bias + BN) shift, stage 1
    wpw_ref  : (Cin, Cout)         pointwise weight, BN scale folded in
    pwsh_ref : (1, Cout)           folded (conv bias + BN) shift, stage 2
    o_ref    : (1, Ho, Wo, Cout)   output block
    xpad_ref : (Hp, Wc, Cin)       VMEM halo scratch; interior lives at
                                   rows [pad, pad+Hin), cols [col_off, col_off+Win)
    """
    _, Hin, Win, Cin = x_ref.shape
    _, Ho, Wo, Cout = o_ref.shape

    # --- build the zero halo in VMEM (replaces wrapper-side jnp.pad) --------
    xpad_ref[...] = jnp.zeros_like(xpad_ref)
    xpad_ref[pad:pad + Hin, col_off:col_off + Win, :] = x_ref[0]

    # --- hoist small operands (reused by every strip) -----------------------
    wdw = wdw_ref[...]                       # (k*k, Cin)
    wpw = wpw_ref[...]                       # (Cin, Cout)
    dwsh = dwsh_ref[...]                     # (1, Cin)
    pwsh = pwsh_ref[...]                     # (1, Cout)

    n_strips = Ho // th
    c0 = col_off - pad                       # scratch column of padded col 0

    def strip_body(s, carry):
        r0 = pl.multiple_of(s * th, th)      # first output row of this strip
        acc = jnp.zeros((th, Wo, Cin), jnp.float32)
        # dx (sublane shift) hoisted out of the dy loop: ksize realigning
        # slices per strip; dy slices are free major-dim views of xs.
        for dx in range(ksize):
            xs = xpad_ref[pl.ds(r0, th + ksize - 1),
                          c0 + dx:c0 + dx + Wo, :]          # (th+k-1, Wo, Cin)
            for dy in range(ksize):
                w_t = wdw[dy * ksize + dx:dy * ksize + dx + 1, :]
                acc = acc + xs[dy:dy + th] * w_t.reshape(1, 1, Cin)
        # stage-1 epilogue: folded BN shift + ReLU (scale already in weights)
        dw = jnp.maximum(acc.reshape(th * Wo, Cin) + dwsh, 0.0)
        # stage-2: pointwise 1x1 conv on the MXU, fused shift + ReLU epilogue
        y = jnp.dot(dw, wpw, preferred_element_type=jnp.float32)
        y = jnp.maximum(y + pwsh, 0.0)
        o_ref[0, pl.ds(r0, th)] = y.reshape(th, Wo, Cout).astype(o_ref.dtype)
        return carry

    jax.lax.fori_loop(0, n_strips, strip_body, 0)


# ----------------------------------------------------------------------------
# Wrapper: BN folding + pallas_call
# ----------------------------------------------------------------------------
def fold_bn(conv_bias, gamma, beta, running_mean, running_var):
    """Fold conv bias + inference-mode BatchNorm into per-channel affine."""
    s = gamma / jnp.sqrt(running_var + EPS)
    return s, (conv_bias - running_mean) * s + beta


def depthwise_separable_conv(x, params, *, ksize=3, stride=1, padding=1):
    """Fused DepthwiseSeparableConv forward (inference-mode BN folded)."""
    assert stride == 1  # TODO(synk): stride != 1 not supported in fused kernel
    N, H, W, Cin = x.shape
    Cout = params["pw_w"].shape[1]
    Ho = H + 2 * padding - ksize + 1
    Wo = W + 2 * padding - ksize + 1

    # Fold conv bias + BN into per-channel scale/shift, then fold the scale
    # into the conv weights (weight prep only — no activation pre-scaling).
    dw_s, dw_t = fold_bn(params["dw_b"], params["bn1_g"], params["bn1_b"],
                         params["bn1_m"], params["bn1_v"])
    pw_s, pw_t = fold_bn(params["pw_b"], params["bn2_g"], params["bn2_b"],
                         params["bn2_m"], params["bn2_v"])
    wdw = (params["dw_w"] * dw_s).reshape(ksize * ksize, Cin).astype(jnp.float32)
    wpw = (params["pw_w"] * pw_s[None, :]).astype(jnp.float32)

    # Halo scratch geometry: interior columns start at a sublane-aligned
    # offset so the interior copy into the scratch needs no realign.
    col_off = ((padding + 7) // 8) * 8 if padding > 0 else 0
    Hp = H + 2 * padding
    Wc = col_off + W + padding

    th = 8 if (Ho % 8 == 0 and Ho >= 8) else Ho   # row-strip height

    kern = functools.partial(_dsconv_kernel, ksize=ksize, pad=padding,
                             col_off=col_off, th=th)
    out = pl.pallas_call(
        kern,
        out_shape=jax.ShapeDtypeStruct((N, Ho, Wo, Cout), jnp.float32),
        grid=(N,),
        in_specs=[
            pl.BlockSpec((1, H, W, Cin), lambda n: (n, 0, 0, 0)),
            pl.BlockSpec((ksize * ksize, Cin), lambda n: (0, 0)),
            pl.BlockSpec((1, Cin), lambda n: (0, 0)),
            pl.BlockSpec((Cin, Cout), lambda n: (0, 0)),
            pl.BlockSpec((1, Cout), lambda n: (0, 0)),
        ],
        out_specs=pl.BlockSpec((1, Ho, Wo, Cout), lambda n: (n, 0, 0, 0)),
        scratch_shapes=[pltpu.VMEM((Hp, Wc, Cin), jnp.float32)],
        compiler_params=pltpu.CompilerParams(
            dimension_semantics=("parallel",)),
    )(x.astype(jnp.float32),
      wdw,
      dw_t.reshape(1, Cin).astype(jnp.float32),
      wpw,
      pw_t.reshape(1, Cout).astype(jnp.float32))
    return out


# ----------------------------------------------------------------------------
# Parameter setup / pure-JAX reference
# ----------------------------------------------------------------------------
def init_params(key, cin, cout, ksize=3):
    ks = jax.random.split(key, 10)

    def normal(k, shape, scale=0.1):
        return scale * jax.random.normal(k, shape, dtype=jnp.float32)

    return dict(
        dw_w=normal(ks[0], (ksize, ksize, cin)),
        dw_b=normal(ks[1], (cin,), 0.01),
        bn1_g=1.0 + normal(ks[2], (cin,)),
        bn1_b=normal(ks[3], (cin,)),
        bn1_m=normal(ks[4], (cin,)),
        bn1_v=1.0 + 0.1 * jnp.abs(jax.random.normal(ks[5], (cin,), jnp.float32)),
        pw_w=normal(ks[6], (cin, cout)),
        pw_b=normal(ks[7], (cout,), 0.01),
        bn2_g=1.0 + normal(ks[8], (cout,)),
        bn2_b=normal(ks[9], (cout,)),
        bn2_m=jnp.zeros((cout,), jnp.float32),
        bn2_v=jnp.ones((cout,), jnp.float32),
    )


def reference_forward(x, p, *, ksize=3, padding=1):
    """Pure-JAX (XLA) reference of the same inference-mode forward (unfolded)."""
    N, H, W, Cin = x.shape
    y = jax.lax.conv_general_dilated(
        x, p["dw_w"].reshape(ksize, ksize, 1, Cin),
        window_strides=(1, 1),
        padding=((padding, padding), (padding, padding)),
        dimension_numbers=("NHWC", "HWIO", "NHWC"),
        feature_group_count=Cin)
    y = y + p["dw_b"]
    y = (y - p["bn1_m"]) * p["bn1_g"] / jnp.sqrt(p["bn1_v"] + EPS) + p["bn1_b"]
    y = jnp.maximum(y, 0.0)
    z = jnp.einsum("nhwc,cd->nhwd", y, p["pw_w"]) + p["pw_b"]
    z = (z - p["bn2_m"]) * p["bn2_g"] / jnp.sqrt(p["bn2_v"] + EPS) + p["bn2_b"]
    return jnp.maximum(z, 0.0)


# ----------------------------------------------------------------------------
if __name__ == "__main__":
    key = jax.random.PRNGKey(0)
    kx, kp = jax.random.split(key)

    # Small shapes consistent with DDSNet's use of this block:
    # NHWC (2, 16, 16, 64) -> (2, 16, 16, 32); torch-NCHW equivalent [2, 64, 16, 16].
    N, H, W, Cin, Cout = 2, 16, 16, 64, 32
    x = jax.random.normal(kx, (N, H, W, Cin), dtype=jnp.float32)
    p = init_params(kp, Cin, Cout)

    fwd = jax.jit(functools.partial(depthwise_separable_conv,
                                    ksize=3, stride=1, padding=1))
    out = jax.block_until_ready(fwd(x, p))

    assert out.shape == (N, H, W, Cout), out.shape
    assert bool(jnp.all(jnp.isfinite(out)))

    ref = reference_forward(x, p)
    max_err = float(jnp.max(jnp.abs(out - ref)))
    assert max_err < 2e-3, f"mismatch vs reference: {max_err}"

    print("KERNEL_OK")
</pallas_src>

<mosaic_0001>
module attributes {stable_mosaic.version = 11 : i64} {
  func.func @_dsconv_kernel(%arg0: i32, %arg1: memref<1x16x16x64xf32, #tpu.memory_space<vmem>>, %arg2: memref<9x64xf32, #tpu.memory_space<vmem>>, %arg3: memref<1x64xf32, #tpu.memory_space<vmem>>, %arg4: memref<64x32xf32, #tpu.memory_space<vmem>>, %arg5: memref<1x32xf32, #tpu.memory_space<vmem>>, %arg6: memref<1x16x16x32xf32, #tpu.memory_space<vmem>>, %arg7: memref<18x25x64xf32, #tpu.memory_space<vmem>>) attributes {dimension_semantics = [#tpu.dimension_semantics<parallel>], iteration_bounds = array<i64: 2>, scalar_prefetch = 0 : i64, scratch_operands = 1 : i64, tpu.core_type = #tpu.core_type<tc>, window_params = [{transform_indices = @transform_0, window_bounds = array<i64: 1, 16, 16, 64>}, {pipeline_mode = #tpu.pipeline_mode<synchronous>, transform_indices = @transform_1, window_bounds = array<i64: 9, 64>}, {pipeline_mode = #tpu.pipeline_mode<synchronous>, transform_indices = @transform_2, window_bounds = array<i64: 1, 64>}, {pipeline_mode = #tpu.pipeline_mode<synchronous>, transform_indices = @transform_3, window_bounds = array<i64: 64, 32>}, {pipeline_mode = #tpu.pipeline_mode<synchronous>, transform_indices = @transform_4, window_bounds = array<i64: 1, 32>}, {transform_indices = @transform_5, window_bounds = array<i64: 1, 16, 16, 32>}]} {
    %cst = arith.constant 0.000000e+00 : f32
    %0 = vector.broadcast %cst : f32 to vector<18x25x64xf32>
    %c0 = arith.constant 0 : index
    %c0_0 = arith.constant 0 : index
    %c0_1 = arith.constant 0 : index
    %1 = vector.load %arg7[%c0, %c0_0, %c0_1] : memref<18x25x64xf32, #tpu.memory_space<vmem>>, vector<18x25x64xf32>
    tpu.vector_store %arg7[%c0, %c0_0, %c0_1], %0 {strides = array<i32>} : memref<18x25x64xf32, #tpu.memory_space<vmem>>, vector<18x25x64xf32>,
    %c0_2 = arith.constant 0 : index
    %c0_3 = arith.constant 0 : index
    %c0_4 = arith.constant 0 : index
    %c0_5 = arith.constant 0 : index
    %2 = vector.load %arg1[%c0_2, %c0_3, %c0_4, %c0_5] : memref<1x16x16x64xf32, #tpu.memory_space<vmem>>, vector<1x16x16x64xf32>
    %3 = vector.shape_cast %2 : vector<1x16x16x64xf32> to vector<16x16x64xf32>
    %c1 = arith.constant 1 : index
    %c8 = arith.constant 8 : index
    %c0_6 = arith.constant 0 : index
    %4 = vector.load %arg7[%c1, %c8, %c0_6] : memref<18x25x64xf32, #tpu.memory_space<vmem>>, vector<16x16x64xf32>
    tpu.vector_store %arg7[%c1, %c8, %c0_6], %3 {strides = array<i32>} : memref<18x25x64xf32, #tpu.memory_space<vmem>>, vector<16x16x64xf32>,
    %c0_7 = arith.constant 0 : index
    %c0_8 = arith.constant 0 : index
    %5 = vector.load %arg2[%c0_7, %c0_8] : memref<9x64xf32, #tpu.memory_space<vmem>>, vector<9x64xf32>
    %c0_9 = arith.constant 0 : index
    %c0_10 = arith.constant 0 : index
    %6 = vector.load %arg4[%c0_9, %c0_10] : memref<64x32xf32, #tpu.memory_space<vmem>>, vector<64x32xf32>
    %c0_11 = arith.constant 0 : index
    %c0_12 = arith.constant 0 : index
    %7 = vector.load %arg3[%c0_11, %c0_12] : memref<1x64xf32, #tpu.memory_space<vmem>>, vector<1x64xf32>
    %c0_13 = arith.constant 0 : index
    %c0_14 = arith.constant 0 : index
    %8 = vector.load %arg5[%c0_13, %c0_14] : memref<1x32xf32, #tpu.memory_space<vmem>>, vector<1x32xf32>
    %c0_i32 = arith.constant 0 : i32
    %c2_i32 = arith.constant 2 : i32
    %9 = arith.addi %c0_i32, %c2_i32 : i32
    %c1_i32 = arith.constant 1 : i32
    scf.for %arg8 = %c0_i32 to %9 step %c1_i32  : i32 {
      %c8_i32 = arith.constant 8 : i32
      %10 = arith.muli %arg8, %c8_i32 : i32
      %11 = tpu.assume_multiple %10, 8 : i32
      %cst_16 = arith.constant 0.000000e+00 : f32
      %12 = vector.broadcast %cst_16 : f32 to vector<8x16x64xf32>
      %13 = arith.index_cast %11 : i32 to index
      %c7 = arith.constant 7 : index
      %c0_17 = arith.constant 0 : index
      %14 = vector.load %arg7[%13, %c7, %c0_17] : memref<18x25x64xf32, #tpu.memory_space<vmem>>, vector<10x16x64xf32>
      %15 = vector.extract_strided_slice %5 {offsets = [0, 0], sizes = [1, 64], strides = [1, 1]} : vector<9x64xf32> to vector<1x64xf32>
      %16 = vector.extract_strided_slice %14 {offsets = [0, 0, 0], sizes = [8, 16, 64], strides = [1, 1, 1]} : vector<10x16x64xf32> to vector<8x16x64xf32>
      %17 = vector.shape_cast %15 : vector<1x64xf32> to vector<1x1x64xf32>
      %18 = vector.broadcast %17 : vector<1x1x64xf32> to vector<8x16x64xf32>
      %19 = arith.mulf %16, %18 : vector<8x16x64xf32>
      %20 = arith.addf %12, %19 : vector<8x16x64xf32>
      %21 = vector.extract_strided_slice %5 {offsets = [3, 0], sizes = [1, 64], strides = [1, 1]} : vector<9x64xf32> to vector<1x64xf32>
      %22 = vector.extract_strided_slice %14 {offsets = [1, 0, 0], sizes = [8, 16, 64], strides = [1, 1, 1]} : vector<10x16x64xf32> to vector<8x16x64xf32>
      %23 = vector.shape_cast %21 : vector<1x64xf32> to vector<1x1x64xf32>
      %24 = vector.broadcast %23 : vector<1x1x64xf32> to vector<8x16x64xf32>
      %25 = arith.mulf %22, %24 : vector<8x16x64xf32>
      %26 = arith.addf %20, %25 : vector<8x16x64xf32>
      %27 = vector.extract_strided_slice %5 {offsets = [6, 0], sizes = [1, 64], strides = [1, 1]} : vector<9x64xf32> to vector<1x64xf32>
      %28 = vector.extract_strided_slice %14 {offsets = [2, 0, 0], sizes = [8, 16, 64], strides = [1, 1, 1]} : vector<10x16x64xf32> to vector<8x16x64xf32>
      %29 = vector.shape_cast %27 : vector<1x64xf32> to vector<1x1x64xf32>
      %30 = vector.broadcast %29 : vector<1x1x64xf32> to vector<8x16x64xf32>
      %31 = arith.mulf %28, %30 : vector<8x16x64xf32>
      %32 = arith.addf %26, %31 : vector<8x16x64xf32>
      %33 = arith.index_cast %11 : i32 to index
      %c8_18 = arith.constant 8 : index
      %c0_19 = arith.constant 0 : index
      %34 = vector.load %arg7[%33, %c8_18, %c0_19] : memref<18x25x64xf32, #tpu.memory_space<vmem>>, vector<10x16x64xf32>
      %35 = vector.extract_strided_slice %5 {offsets = [1, 0], sizes = [1, 64], strides = [1, 1]} : vector<9x64xf32> to vector<1x64xf32>
      %36 = vector.extract_strided_slice %34 {offsets = [0, 0, 0], sizes = [8, 16, 64], strides = [1, 1, 1]} : vector<10x16x64xf32> to vector<8x16x64xf32>
      %37 = vector.shape_cast %35 : vector<1x64xf32> to vector<1x1x64xf32>
      %38 = vector.broadcast %37 : vector<1x1x64xf32> to vector<8x16x64xf32>
      %39 = arith.mulf %36, %38 : vector<8x16x64xf32>
      %40 = arith.addf %32, %39 : vector<8x16x64xf32>
      %41 = vector.extract_strided_slice %5 {offsets = [4, 0], sizes = [1, 64], strides = [1, 1]} : vector<9x64xf32> to vector<1x64xf32>
      %42 = vector.extract_strided_slice %34 {offsets = [1, 0, 0], sizes = [8, 16, 64], strides = [1, 1, 1]} : vector<10x16x64xf32> to vector<8x16x64xf32>
      %43 = vector.shape_cast %41 : vector<1x64xf32> to vector<1x1x64xf32>
      %44 = vector.broadcast %43 : vector<1x1x64xf32> to vector<8x16x64xf32>
      %45 = arith.mulf %42, %44 : vector<8x16x64xf32>
      %46 = arith.addf %40, %45 : vector<8x16x64xf32>
      %47 = vector.extract_strided_slice %5 {offsets = [7, 0], sizes = [1, 64], strides = [1, 1]} : vector<9x64xf32> to vector<1x64xf32>
      %48 = vector.extract_strided_slice %34 {offsets = [2, 0, 0], sizes = [8, 16, 64], strides = [1, 1, 1]} : vector<10x16x64xf32> to vector<8x16x64xf32>
      %49 = vector.shape_cast %47 : vector<1x64xf32> to vector<1x1x64xf32>
      %50 = vector.broadcast %49 : vector<1x1x64xf32> to vector<8x16x64xf32>
      %51 = arith.mulf %48, %50 : vector<8x16x64xf32>
      %52 = arith.addf %46, %51 : vector<8x16x64xf32>
      %53 = arith.index_cast %11 : i32 to index
      %c9 = arith.constant 9 : index
      %c0_20 = arith.constant 0 : index
      %54 = vector.load %arg7[%53, %c9, %c0_20] : memref<18x25x64xf32, #tpu.memory_space<vmem>>, vector<10x16x64xf32>
      %55 = vector.extract_strided_slice %5 {offsets = [2, 0], sizes = [1, 64], strides = [1, 1]} : vector<9x64xf32> to vector<1x64xf32>
      %56 = vector.extract_strided_slice %54 {offsets = [0, 0, 0], sizes = [8, 16, 64], strides = [1, 1, 1]} : vector<10x16x64xf32> to vector<8x16x64xf32>
      %57 = vector.shape_cast %55 : vector<1x64xf32> to vector<1x1x64xf32>
      %58 = vector.broadcast %57 : vector<1x1x64xf32> to vector<8x16x64xf32>
      %59 = arith.mulf %56, %58 : vector<8x16x64xf32>
      %60 = arith.addf %52, %59 : vector<8x16x64xf32>
      %61 = vector.extract_strided_slice %5 {offsets = [5, 0], sizes = [1, 64], strides = [1, 1]} : vector<9x64xf32> to vector<1x64xf32>
      %62 = vector.extract_strided_slice %54 {offsets = [1, 0, 0], sizes = [8, 16, 64], strides = [1, 1, 1]} : vector<10x16x64xf32> to vector<8x16x64xf32>
      %63 = vector.shape_cast %61 : vector<1x64xf32> to vector<1x1x64xf32>
      %64 = vector.broadcast %63 : vector<1x1x64xf32> to vector<8x16x64xf32>
      %65 = arith.mulf %62, %64 : vector<8x16x64xf32>
      %66 = arith.addf %60, %65 : vector<8x16x64xf32>
      %67 = vector.extract_strided_slice %5 {offsets = [8, 0], sizes = [1, 64], strides = [1, 1]} : vector<9x64xf32> to vector<1x64xf32>
      %68 = vector.extract_strided_slice %54 {offsets = [2, 0, 0], sizes = [8, 16, 64], strides = [1, 1, 1]} : vector<10x16x64xf32> to vector<8x16x64xf32>
      %69 = vector.shape_cast %67 : vector<1x64xf32> to vector<1x1x64xf32>
      %70 = vector.broadcast %69 : vector<1x1x64xf32> to vector<8x16x64xf32>
      %71 = arith.mulf %68, %70 : vector<8x16x64xf32>
      %72 = arith.addf %66, %71 : vector<8x16x64xf32>
      %73 = vector.shape_cast %72 : vector<8x16x64xf32> to vector<128x64xf32>
      %74 = vector.broadcast %7 : vector<1x64xf32> to vector<128x64xf32>
      %75 = arith.addf %73, %74 : vector<128x64xf32>
      %cst_21 = arith.constant 0.000000e+00 : f32
      %76 = vector.broadcast %cst_21 : f32 to vector<128x64xf32>
      %77 = arith.maximumf %75, %76 : vector<128x64xf32>
      %cst_22 = arith.constant dense<0.000000e+00> : vector<128x32xf32>
      %78 = tpu.matmul %77, %6, %cst_22 {dimension_numbers = #tpu.dot_dimension_numbers<[1], [0], [0], [1], [0, 0, 1, 1], [], []>} : vector<128x64xf32>, vector<64x32xf32>, vector<128x32xf32> -> vector<128x32xf32>
      %79 = vector.broadcast %8 : vector<1x32xf32> to vector<128x32xf32>
      %80 = arith.addf %78, %79 : vector<128x32xf32>
      %cst_23 = arith.constant 0.000000e+00 : f32
      %81 = vector.broadcast %cst_23 : f32 to vector<128x32xf32>
      %82 = arith.maximumf %80, %81 : vector<128x32xf32>
      %83 = vector.shape_cast %82 : vector<128x32xf32> to vector<8x16x32xf32>
      %c0_24 = arith.constant 0 : index
      %84 = arith.index_cast %11 : i32 to index
      %c0_25 = arith.constant 0 : index
      %c0_26 = arith.constant 0 : index
      %85 = vector.load %arg6[%c0_24, %84, %c0_25, %c0_26] : memref<1x16x16x32xf32, #tpu.memory_space<vmem>>, vector<1x8x16x32xf32>
      %86 = vector.shape_cast %85 : vector<1x8x16x32xf32> to vector<8x16x32xf32>
      %87 = vector.shape_cast %83 : vector<8x16x32xf32> to vector<1x8x16x32xf32>
      tpu.vector_store %arg6[%c0_24, %84, %c0_25, %c0_26], %87 {strides = array<i32>} : memref<1x16x16x32xf32, #tpu.memory_space<vmem>>, vector<1x8x16x32xf32>,
    }
    %c2_i32_15 = arith.constant 2 : i32
    return
  }
  func.func @transform_0(%arg0: i32) -> (i32, i32, i32, i32) {
    %c0_i32 = arith.constant 0 : i32
    %c0_i32_0 = arith.constant 0 : i32
    %c0_i32_1 = arith.constant 0 : i32
    %c0_i32_2 = arith.constant 0 : i32
    return %arg0, %c0_i32, %c0_i32_0, %c0_i32_1 : i32, i32, i32, i32
  }
  func.func @transform_1(%arg0: i32) -> (i32, i32) {
    %c0_i32 = arith.constant 0 : i32
    %c0_i32_0 = arith.constant 0 : i32
    %c0_i32_1 = arith.constant 0 : i32
    return %c0_i32, %c0_i32_0 : i32, i32
  }
  func.func @transform_2(%arg0: i32) -> (i32, i32) {
    %c0_i32 = arith.constant 0 : i32
    %c0_i32_0 = arith.constant 0 : i32
    %c0_i32_1 = arith.constant 0 : i32
    return %c0_i32, %c0_i32_0 : i32, i32
  }
  func.func @transform_3(%arg0: i32) -> (i32, i32) {
    %c0_i32 = arith.constant 0 : i32
    %c0_i32_0 = arith.constant 0 : i32
    %c0_i32_1 = arith.constant 0 : i32
    return %c0_i32, %c0_i32_0 : i32, i32
  }
  func.func @transform_4(%arg0: i32) -> (i32, i32) {
    %c0_i32 = arith.constant 0 : i32
    %c0_i32_0 = arith.constant 0 : i32
    %c0_i32_1 = arith.constant 0 : i32
    return %c0_i32, %c0_i32_0 : i32, i32
  }
  func.func @transform_5(%arg0: i32) -> (i32, i32, i32, i32) {
    %c0_i32 = arith.constant 0 : i32
    %c0_i32_0 = arith.constant 0 : i32
    %c0_i32_1 = arith.constant 0 : i32
    %c0_i32_2 = arith.constant 0 : i32
    return %arg0, %c0_i32, %c0_i32_0, %c0_i32_1 : i32, i32, i32, i32
  }
}

</mosaic_0001>

<bundles_post_ra>
// kernel: depthwise_separable_conv.1
= control target key start
LH: loop header
LB: loop body
LE: loop exit
PB: predicated region body
PF: predicated region fallthrough
CT: control target
= control target key end

     0   :  { %10 = vsyncpa [#allocation4], 0  ;;  %s2502_s0 = inlined_call_operand.hbm [shape: f32[2,16,16,64], index: 0, kind: input, shape index: {}]   ;;  %s2503_s1 = inlined_call_operand.vmem [shape: f32[9,64], index: 1, kind: input, shape index: {}]   ;;  %s2504_s2 = inlined_call_operand.vmem [shape: f32[1,64], index: 2, kind: input, shape index: {}]   ;;  %s2505_s3 = inlined_call_operand.vmem [shape: f32[64,32], index: 3, kind: input, shape index: {}]   ;;  %s2506_s4 = inlined_call_operand.vmem [shape: f32[1,32], index: 4, kind: input, shape index: {}]   ;;  %s2507_s5 = inlined_call_operand.hbm [shape: f32[2,16,16,32], index: 5, kind: output, shape index: {}]  }
   0x1   :  { %12 = vsyncpa [#allocation4 + $0x1], 0 }
   0x2   :  { %13 = vsyncpa [#allocation5], 0 }
   0x3   :  { %15 = vsyncpa [#allocation5 + $0x1], 0  ;;  %s1485_s18 = smov 0   ;;  %s1487_s19 = smov 0  }
   0x4   :  { %s1489_s20 = smov 0   ;;  %s1491_s21 = smov 0  }
   0x5 LB: > { %s1506_s22 = sadd.s32 4294967295, %s1442_s21   ;;  %s1155_s23 = sadd.s32 4294967294, %s1442_s21   ;;  %s1442_s21 = sphi %s1491_s21, %s2586_s21   ;;  %s1438_s20 = sphi %s1489_s20, %s2585_s20   ;;  %s1434_s19 = sphi %s1487_s19, %s2584_s19   ;;  %s1430_s18 = sphi %s1485_s18, %s2583_s18  }
   0x6   : > { %s1510_s24 = sadd.s32 1, %s1442_s21   ;;  %s28_s25 = sadd.s32 1, %s1438_s20 }
   0x7   : > { %s25_s26 = ssub.s32 %s1442_s21, %s1510_s24  ;;  %p35_p0 = scmp.ne.s32.totalorder %s1438_s20, %s1434_s19 }
   0x8   : > { %p26_p1 = scmp.eq.s32.totalorder %s25_s26, 0  ;;  %p36_p2 = scmp.eq.s32.totalorder %s1442_s21, 0 }
   0x9   : > { %p41_p3 = scmp.ne.s32.totalorder %s1434_s19, %s1430_s18  ;;  %p42_p4 = scmp.eq.s32.totalorder %s1506_s22, 0 }
   0xa   : > { %s1522_s27 = scalar_select %p26_p1, %s1438_s20, %s28_s25  }
   0xb   : > { %p1524_p5 = por %p36_p2, %p35_p0  ;;  %p1528_p6 = por %p42_p4, %p41_p3 }
   0xc   : > { %p149_p7 = scmp.eq.s32.totalorder %s1506_s22, 1  ;;  %p155_p8 = scmp.eq.s32.totalorder %s1155_s23, 1 }
   0xd   : > { %p1295_p10 = scmp.lt.s32.totalorder %s1442_s21, 2  ;;  %s187_s7 = sand.u32 1, %s1438_s20  }
   0xe   : > { %p1535_p11 = por %p149_p7, %p35_p0  ;;  %p1539_p12 = por %p155_p8, %p41_p3 }
   0xf   : > { %s1191_s8 = sshll.u32 %s1442_s21, 12  ;;  %s1158_s9 = sshll.u32 %s187_s7, 8 }
  0x10   : > { %s2529_s30 = scalar_select %p1535_p11, 1, 0 }
  0x11   : > { %s2530_s6 = scalar_select %p1539_p12, 1, 0 }
  0x12   : > { %s1548_s12 = scalar_lea.hbm %s2502_s0, %s1191_s8  ;;  %s191_s13 = scalar_lea.vmem [#allocation3], %s1158_s9 }
  0x13   : > { %s198_s14 = sshll.u32 %s191_s13, 4  ;;  %p1552_p13 = pnand %p1295_p10, %p1524_p5  ;;  %s1556_s14 = int_to_ptr.vmem [resolvable:$true] %s198_s14 }
  0x14   : > { %s1558_s16 = scalar_lea.sflag [#allocation4], %s187_s7  ;;  %s1342_s17 = scalar_lea.hbm %s1548_s12, 4096 }
  0x15   : > { %p1343_p0 = scmp.ne.s32.totalorder %s1548_s12, %s1342_s17  ;;  %p1344_p1 = pneg %p1552_p13 }
  0x16   : > { %s1347_s26 = scalar_lea.hbm %s2502_s0, 8192  ;;  %p1348_p4 = scmp.lt.u32.totalorder %s1548_s12, %s2502_s0 }
  0x17   : > { %p1345_p2 = pnand %p1344_p1, %p1343_p0  ;;  %p1349_p5 = scmp.lt.u32.totalorder %s1347_s26, %s1342_s17 }
  0x18   : > { %p1351_p8 = scmp.lt.u32.totalorder %s1342_s17, %s1548_s12 }
  0x19   : > { %p1346_p3 = pneg %p1345_p2  ;;  %p1350_p7 = por %p1349_p5, %p1348_p4 }
  0x1b   : > { %p1352_p10 = por %p1351_p8, %p1350_p7 }
  0x1d   : > { %p1353_p9 = pnand %p1352_p10, %p1346_p3 }
  0x1f   : > { %1356 = shalt.err (!%p1353_p9)
}
  0x20   : > { %s1357_s7 = scalar_lea.vmem %s1556_s14, 4096  ;;  %s1448_s9 = smov [#allocation3]  }
  0x21   : > { %p1358_p0 = scmp.ne.s32.totalorder %s1556_s14, %s1357_s7  ;;  %s1362_s10 = sshll.u32 %s1448_s9, 4  ;;  %s1363_s10 = int_to_ptr.vmem [resolvable:$false] %s1362_s10 }
  0x22   : > { %s1364_s11 = scalar_lea.vmem %s1363_s10, 8192  ;;  %p1365_p11 = scmp.lt.s32.totalorder %s1556_s14, %s1363_s10 }
  0x23   : > { %p1360_p2 = pnand %p1358_p0, %p1344_p1  ;;  %p1366_p4 = scmp.lt.s32.totalorder %s1364_s11, %s1357_s7 }
  0x25   : > { %p1361_p12 = pneg %p1360_p2  ;;  %p1367_p5 = por %p1366_p4, %p1365_p11 }
  0x27   : > { %p1368_p7 = pnand %p1367_p5, %p1361_p12 }
  0x29   : > { %1371 = shalt.err (!%p1368_p7)
}
  0x2a   : > { %s1449_s13 = smov 128   ;;  %s1450_s17 = smov 8  }
  0x2b   : > { %1290 = dma.hbm_to_vmem [thread:$0]  (!%p1552_p13), %s1548_s12, 4096, %s1556_s14, %s1558_s16, %s1449_s13, %s1449_s13, %s1450_s17  }
  0x2c   : > { %p1161_p9 = scmp.ge.s32.totalorder %s1442_s21, 1  ;;  %p206_p1 = scmp.lt.s32.totalorder %s1442_s21, 3 }
  0x2e   : > { %p207_p3 = pnand %p1161_p9, %p206_p1 }
  0x30   : > { %210 = sbr.rel (%p207_p3) target bundleno = 448 (0x1c0), region = 40 }
  0x37   : > { %s1589_s23 = sand.u32 1, %s1434_s19  }
  0x38   : > { %s1162_s25 = sshll.u32 %s1589_s23, 8  ;;  %s213_s26 = scalar_lea.sflag [#allocation4], %s1589_s23 }
  0x39   : > { %s1595_s28 = scalar_lea.vmem [#allocation3], %s1162_s25 }
  0x3a   : > { %1421 = dma.done.wait (%p1528_p6), %s213_s26, 4096  }
  0x3b   : > { %1423 = vsyncadd (%p1528_p6), %s213_s26, 4294963200  ;;  %vm243_vm0 = vcmask 523264   ;;  %vm247_vm1 = vcmask 516096   ;;  %v1451_v0 = vmov 0.0   ;;  %v1748_v1 = vld [vmem:[%s2503_s1] sm:$0xff]  ;;  %v1763_v4 = vld [vmem:[%s2505_s3 + $0x8] sm:$0xff] }
  0x3c   : > { %250 = vst.msk [vmem:[#allocation2 + $0x28] sm:$0xff] %vm243_vm0, %v1451_v0  ;;  %244 = vst.msk [vmem:[#allocation2] sm:$0xff] %vm243_vm0, %v1451_v0  ;;  %v1753_v2 = vld [vmem:[%s2503_s1 + $0x8] ss:$0 sm:$0xff]  ;;  %v1758_v3 = vld [vmem:[%s2505_s3] sm:$0xff]  ;;  %s1871_s17 = scalar_lea.vmem [#allocation6], %s1162_s25 }
  0x3d   : > { %245 = vst.msk [vmem:[#allocation2 + $0x8] sm:$0xff] %vm243_vm0, %v1451_v0  ;;  %246 = vst.msk [vmem:[#allocation2 + $0x10] sm:$0xff] %vm243_vm0, %v1451_v0  ;;  %v1768_v5 = vld [vmem:[%s2505_s3 + $0x10] sm:$0xff]  ;;  %v1773_v6 = vld [vmem:[%s2505_s3 + $0x18] sm:$0xff]  ;;  %s1873_s26 = smov 0  }
  0x3e   : > { %249 = vst.msk [vmem:[#allocation2 + $0x20] sm:$0xff] %vm243_vm0, %v1451_v0  ;;  %251 = vst.msk [vmem:[#allocation2 + $0x30] sm:$0xff] %vm243_vm0, %v1451_v0  ;;  %v1778_v7 = vld [vmem:[%s2505_s3 + $0x20] sm:$0xff]  ;;  %v1783_v8 = vld [vmem:[%s2505_s3 + $0x28] sm:$0xff] }
  0x3f   : > { %253 = vst.msk [vmem:[#allocation2 + $0x40] sm:$0xff] %vm243_vm0, %v1451_v0  ;;  %254 = vst.msk [vmem:[#allocation2 + $0x48] sm:$0xff] %vm243_vm0, %v1451_v0  ;;  %v1788_v9 = vld [vmem:[%s2505_s3 + $0x30] sm:$0xff]  ;;  %v1793_v10 = vld [vmem:[%s2505_s3 + $0x38] sm:$0xff] }
  0x40   : > { %255 = vst.msk [vmem:[#allocation2 + $0x50] sm:$0xff] %vm243_vm0, %v1451_v0  ;;  %257 = vst.msk [vmem:[#allocation2 + $0x60] sm:$0xff] %vm243_vm0, %v1451_v0  ;;  %v1798_v11 = vld [vmem:[%s2504_s2] ss:$0 sm:$0xff]  ;;  %v318_v14 = vld [vmem:[%s1595_s28 + $0x8] sm:$0xff] }
  0x41   : > { %258 = vst.msk [vmem:[#allocation2 + $0x68] sm:$0xff] %vm243_vm0, %v1451_v0  ;;  %259 = vst.msk [vmem:[#allocation2 + $0x70] sm:$0xff] %vm243_vm0, %v1451_v0  ;;  %v1803_v12 = vld [vmem:[%s2506_s4] ss:$0 sm:$0xff]  ;;  %v319_v15 = vld [vmem:[%s1595_s28 + $0x10] sm:$0xff] }
  0x42   : > { %261 = vst.msk [vmem:[#allocation2 + $0x80] sm:$0xff] %vm243_vm0, %v1451_v0  ;;  %262 = vst.msk [vmem:[#allocation2 + $0x88] sm:$0xff] %vm243_vm0, %v1451_v0  ;;  %v317_v13 = vld [vmem:[%s1595_s28] sm:$0xff]  ;;  %v320_v16 = vld [vmem:[%s1595_s28 + $0x18] sm:$0xff] }
  0x43   : > { %263 = vst.msk [vmem:[#allocation2 + $0x90] sm:$0xff] %vm243_vm0, %v1451_v0  ;;  %265 = vst.msk [vmem:[#allocation2 + $0xa0] sm:$0xff] %vm243_vm0, %v1451_v0  ;;  %v321_v17 = vld [vmem:[%s1595_s28 + $0x20] sm:$0xff]  ;;  %v322_v18 = vld [vmem:[%s1595_s28 + $0x28] sm:$0xff] }
  0x44   : > { %266 = vst.msk [vmem:[#allocation2 + $0xa8] sm:$0xff] %vm243_vm0, %v1451_v0  ;;  %267 = vst.msk [vmem:[#allocation2 + $0xb0] sm:$0xff] %vm243_vm0, %v1451_v0  ;;  %v323_v19 = vld [vmem:[%s1595_s28 + $0x30] sm:$0xff]  ;;  %v324_v20 = vld [vmem:[%s1595_s28 + $0x38] sm:$0xff] }
  0x45   : > { %269 = vst.msk [vmem:[#allocation2 + $0xc0] sm:$0xff] %vm243_vm0, %v1451_v0  ;;  %270 = vst.msk [vmem:[#allocation2 + $0xc8] sm:$0xff] %vm243_vm0, %v1451_v0  ;;  %v325_v21 = vld [vmem:[%s1595_s28 + $0x40] sm:$0xff]  ;;  %v326_v22 = vld [vmem:[%s1595_s28 + $0x48] sm:$0xff] }
  0x46   : > { %271 = vst.msk [vmem:[#allocation2 + $0xd0] sm:$0xff] %vm243_vm0, %v1451_v0  ;;  %273 = vst.msk [vmem:[#allocation2 + $0xe0] sm:$0xff] %vm243_vm0, %v1451_v0  ;;  %v327_v23 = vld [vmem:[%s1595_s28 + $0x50] sm:$0xff]  ;;  %v328_v24 = vld [vmem:[%s1595_s28 + $0x58] sm:$0xff] }
  0x47   : > { %274 = vst.msk [vmem:[#allocation2 + $0xe8] sm:$0xff] %vm243_vm0, %v1451_v0  ;;  %275 = vst.msk [vmem:[#allocation2 + $0xf0] sm:$0xff] %vm243_vm0, %v1451_v0  ;;  %v329_v25 = vld [vmem:[%s1595_s28 + $0x60] sm:$0xff]  ;;  %v330_v26 = vld [vmem:[%s1595_s28 + $0x68] sm:$0xff] }
  0x48   : > { %277 = vst.msk [vmem:[#allocation2 + $0x100] sm:$0xff] %vm243_vm0, %v1451_v0  ;;  %278 = vst.msk [vmem:[#allocation2 + $0x108] sm:$0xff] %vm243_vm0, %v1451_v0  ;;  %v331_v27 = vld [vmem:[%s1595_s28 + $0x70] sm:$0xff]  ;;  %v332_v28 = vld [vmem:[%s1595_s28 + $0x78] sm:$0xff] }
  0x49   : > { %279 = vst.msk [vmem:[#allocation2 + $0x110] sm:$0xff] %vm243_vm0, %v1451_v0  ;;  %281 = vst.msk [vmem:[#allocation2 + $0x120] sm:$0xff] %vm243_vm0, %v1451_v0  ;;  %v333_v29 = vld [vmem:[%s1595_s28 + $0x80] sm:$0xff]  ;;  %v334_v30 = vld [vmem:[%s1595_s28 + $0x88] sm:$0xff] }
  0x4a   : > { %282 = vst.msk [vmem:[#allocation2 + $0x128] sm:$0xff] %vm243_vm0, %v1451_v0  ;;  %283 = vst.msk [vmem:[#allocation2 + $0x130] sm:$0xff] %vm243_vm0, %v1451_v0  ;;  %v335_v31 = vld [vmem:[%s1595_s28 + $0x90] sm:$0xff]  ;;  %v336_v32 = vld [vmem:[%s1595_s28 + $0x98] sm:$0xff] }
  0x4b   : > { %285 = vst.msk [vmem:[#allocation2 + $0x140] sm:$0xff] %vm243_vm0, %v1451_v0  ;;  %286 = vst.msk [vmem:[#allocation2 + $0x148] sm:$0xff] %vm243_vm0, %v1451_v0  ;;  %v337_v33 = vld [vmem:[%s1595_s28 + $0xa0] sm:$0xff]  ;;  %v338_v34 = vld [vmem:[%s1595_s28 + $0xa8] sm:$0xff] }
  0x4c   : > { %287 = vst.msk [vmem:[#allocation2 + $0x150] sm:$0xff] %vm243_vm0, %v1451_v0  ;;  %289 = vst.msk [vmem:[#allocation2 + $0x160] sm:$0xff] %vm243_vm0, %v1451_v0  ;;  %v339_v35 = vld [vmem:[%s1595_s28 + $0xb0] sm:$0xff]  ;;  %v340_v36 = vld [vmem:[%s1595_s28 + $0xb8] sm:$0xff] }
  0x4d   : > { %290 = vst.msk [vmem:[#allocation2 + $0x168] sm:$0xff] %vm243_vm0, %v1451_v0  ;;  %291 = vst.msk [vmem:[#allocation2 + $0x170] sm:$0xff] %vm243_vm0, %v1451_v0  ;;  %v341_v37 = vld [vmem:[%s1595_s28 + $0xc0] sm:$0xff]  ;;  %v342_v38 = vld [vmem:[%s1595_s28 + $0xc8] sm:$0xff] }
  0x4e   : > { %293 = vst.msk [vmem:[#allocation2 + $0x180] sm:$0xff] %vm243_vm0, %v1451_v0  ;;  %294 = vst.msk [vmem:[#allocation2 + $0x188] sm:$0xff] %vm243_vm0, %v1451_v0  ;;  %v343_v39 = vld [vmem:[%s1595_s28 + $0xd0] sm:$0xff]  ;;  %v344_v40 = vld [vmem:[%s1595_s28 + $0xd8] sm:$0xff] }
  0x4f   : > { %295 = vst.msk [vmem:[#allocation2 + $0x190] sm:$0xff] %vm243_vm0, %v1451_v0  ;;  %297 = vst.msk [vmem:[#allocation2 + $0x1a0] sm:$0xff] %vm243_vm0, %v1451_v0  ;;  %v345_v41 = vld [vmem:[%s1595_s28 + $0xe0] sm:$0xff]  ;;  %v346_v42 = vld [vmem:[%s1595_s28 + $0xe8] sm:$0xff] }
  0x50   : > { %298 = vst.msk [vmem:[#allocation2 + $0x1a8] sm:$0xff] %vm243_vm0, %v1451_v0  ;;  %299 = vst.msk [vmem:[#allocation2 + $0x1b0] sm:$0xff] %vm243_vm0, %v1451_v0  ;;  %v347_v43 = vld [vmem:[%s1595_s28 + $0xf0] sm:$0xff]  ;;  %v348_v44 = vld [vmem:[%s1595_s28 + $0xf8] sm:$0xff] }
  0x51   : > { %301 = vst.msk [vmem:[#allocation2 + $0x1c0] sm:$0xff] %vm243_vm0, %v1451_v0  ;;  %302 = vst.msk [vmem:[#allocation2 + $0x1c8] sm:$0xff] %vm243_vm0, %v1451_v0 }
  0x52   : > { %303 = vst.msk [vmem:[#allocation2 + $0x1d0] sm:$0xff] %vm243_vm0, %v1451_v0  ;;  %305 = vst.msk [vmem:[#allocation2 + $0x1e0] sm:$0xff] %vm243_vm0, %v1451_v0 }
  0x53   : > { %306 = vst.msk [vmem:[#allocation2 + $0x1e8] sm:$0xff] %vm243_vm0, %v1451_v0  ;;  %307 = vst.msk [vmem:[#allocation2 + $0x1f0] sm:$0xff] %vm243_vm0, %v1451_v0 }
  0x54   : > { %309 = vst.msk [vmem:[#allocation2 + $0x200] sm:$0xff] %vm243_vm0, %v1451_v0  ;;  %310 = vst.msk [vmem:[#allocation2 + $0x208] sm:$0xff] %vm243_vm0, %v1451_v0 }
  0x55   : > { %311 = vst.msk [vmem:[#allocation2 + $0x210] sm:$0xff] %vm243_vm0, %v1451_v0  ;;  %313 = vst.msk [vmem:[#allocation2 + $0x220] sm:$0xff] %vm243_vm0, %v1451_v0 }
  0x56   : > { %314 = vst.msk [vmem:[#allocation2 + $0x228] sm:$0xff] %vm243_vm0, %v1451_v0  ;;  %315 = vst.msk [vmem:[#allocation2 + $0x230] sm:$0xff] %vm243_vm0, %v1451_v0 }
  0x57   : > { %248 = vst.msk [vmem:[#allocation2 + $0x18] sm:$0x1] %vm247_vm1, %v1451_v0  ;;  %252 = vst.msk [vmem:[#allocation2 + $0x38] sm:$0x1] %vm247_vm1, %v1451_v0 }
  0x58   : > { %256 = vst.msk [vmem:[#allocation2 + $0x58] sm:$0x1] %vm247_vm1, %v1451_v0  ;;  %260 = vst.msk [vmem:[#allocation2 + $0x78] sm:$0x1] %vm247_vm1, %v1451_v0 }
  0x59   : > { %264 = vst.msk [vmem:[#allocation2 + $0x98] sm:$0x1] %vm247_vm1, %v1451_v0  ;;  %268 = vst.msk [vmem:[#allocation2 + $0xb8] sm:$0x1] %vm247_vm1, %v1451_v0 }
  0x5a   : > { %272 = vst.msk [vmem:[#allocation2 + $0xd8] sm:$0x1] %vm247_vm1, %v1451_v0  ;;  %276 = vst.msk [vmem:[#allocation2 + $0xf8] sm:$0x1] %vm247_vm1, %v1451_v0 }
  0x5b   : > { %280 = vst.msk [vmem:[#allocation2 + $0x118] sm:$0x1] %vm247_vm1, %v1451_v0  ;;  %284 = vst.msk [vmem:[#allocation2 + $0x138] sm:$0x1] %vm247_vm1, %v1451_v0 }
  0x5c   : > { %288 = vst.msk [vmem:[#allocation2 + $0x158] sm:$0x1] %vm247_vm1, %v1451_v0  ;;  %292 = vst.msk [vmem:[#allocation2 + $0x178] sm:$0x1] %vm247_vm1, %v1451_v0 }
  0x5d   : > { %296 = vst.msk [vmem:[#allocation2 + $0x198] sm:$0x1] %vm247_vm1, %v1451_v0  ;;  %300 = vst.msk [vmem:[#allocation2 + $0x1b8] sm:$0x1] %vm247_vm1, %v1451_v0 }
  0x5e   : > { %304 = vst.msk [vmem:[#allocation2 + $0x1d8] sm:$0x1] %vm247_vm1, %v1451_v0  ;;  %308 = vst.msk [vmem:[#allocation2 + $0x1f8] sm:$0x1] %vm247_vm1, %v1451_v0 }
  0x5f   : > { %312 = vst.msk [vmem:[#allocation2 + $0x218] sm:$0x1] %vm247_vm1, %v1451_v0  ;;  %316 = vst.msk [vmem:[#allocation2 + $0x238] sm:$0x1] %vm247_vm1, %v1451_v0 }
  0x60   : > { %2532 = vst [vmem:[#allocation9_spill] sm:$0xff] %v1748_v1  ;;  %2533 = vst [vmem:[#allocation10_spill] sm:$0xff] %v1758_v3 }
  0x61   : > { %2534 = vst [vmem:[#allocation11_spill] sm:$0xff] %v1763_v4  ;;  %2535 = vst [vmem:[#allocation12_spill] sm:$0xff] %v1768_v5 }
  0x62   : > { %2536 = vst [vmem:[#allocation13_spill] sm:$0xff] %v1773_v6  ;;  %2537 = vst [vmem:[#allocation14_spill] sm:$0xff] %v1778_v7 }
  0x63   : > { %2538 = vst [vmem:[#allocation15_spill] sm:$0xff] %v1783_v8  ;;  %2539 = vst [vmem:[#allocation16_spill] sm:$0xff] %v1788_v9 }
  0x64   : > { %2540 = vst [vmem:[#allocation17_spill] sm:$0xff] %v1793_v10  ;;  %2541 = vst [vmem:[#allocation18_spill] sm:$0xff] %v1803_v12 }
  0x65   : > { %350 = vst.msk [vmem:[#allocation2 + $0x28] sm:$0xff] %vm243_vm0, %v317_v13  ;;  %351 = vst.msk [vmem:[#allocation2 + $0x30] sm:$0xff] %vm243_vm0, %v318_v14 }
  0x66   : > { %352 = vst.msk [vmem:[#allocation2 + $0x48] sm:$0xff] %vm243_vm0, %v319_v15  ;;  %353 = vst.msk [vmem:[#allocation2 + $0x50] sm:$0xff] %vm243_vm0, %v320_v16 }
  0x67   : > { %354 = vst.msk [vmem:[#allocation2 + $0x68] sm:$0xff] %vm243_vm0, %v321_v17  ;;  %355 = vst.msk [vmem:[#allocation2 + $0x70] sm:$0xff] %vm243_vm0, %v322_v18 }
  0x68   : > { %356 = vst.msk [vmem:[#allocation2 + $0x88] sm:$0xff] %vm243_vm0, %v323_v19  ;;  %357 = vst.msk [vmem:[#allocation2 + $0x90] sm:$0xff] %vm243_vm0, %v324_v20 }
  0x69   : > { %358 = vst.msk [vmem:[#allocation2 + $0xa8] sm:$0xff] %vm243_vm0, %v325_v21  ;;  %359 = vst.msk [vmem:[#allocation2 + $0xb0] sm:$0xff] %vm243_vm0, %v326_v22 }
  0x6a   : > { %360 = vst.msk [vmem:[#allocation2 + $0xc8] sm:$0xff] %vm243_vm0, %v327_v23  ;;  %361 = vst.msk [vmem:[#allocation2 + $0xd0] sm:$0xff] %vm243_vm0, %v328_v24 }
  0x6b   : > { %362 = vst.msk [vmem:[#allocation2 + $0xe8] sm:$0xff] %vm243_vm0, %v329_v25  ;;  %363 = vst.msk [vmem:[#allocation2 + $0xf0] sm:$0xff] %vm243_vm0, %v330_v26 }
  0x6c   : > { %364 = vst.msk [vmem:[#allocation2 + $0x108] sm:$0xff] %vm243_vm0, %v331_v27  ;;  %365 = vst.msk [vmem:[#allocation2 + $0x110] sm:$0xff] %vm243_vm0, %v332_v28 }
  0x6d   : > { %366 = vst.msk [vmem:[#allocation2 + $0x128] sm:$0xff] %vm243_vm0, %v333_v29  ;;  %367 = vst.msk [vmem:[#allocation2 + $0x130] sm:$0xff] %vm243_vm0, %v334_v30 }
  0x6e   : > { %368 = vst.msk [vmem:[#allocation2 + $0x148] sm:$0xff] %vm243_vm0, %v335_v31  ;;  %369 = vst.msk [vmem:[#allocation2 + $0x150] sm:$0xff] %vm243_vm0, %v336_v32 }
  0x6f   : > { %370 = vst.msk [vmem:[#allocation2 + $0x168] sm:$0xff] %vm243_vm0, %v337_v33  ;;  %371 = vst.msk [vmem:[#allocation2 + $0x170] sm:$0xff] %vm243_vm0, %v338_v34 }
  0x70   : > { %372 = vst.msk [vmem:[#allocation2 + $0x188] sm:$0xff] %vm243_vm0, %v339_v35  ;;  %373 = vst.msk [vmem:[#allocation2 + $0x190] sm:$0xff] %vm243_vm0, %v340_v36 }
  0x71   : > { %374 = vst.msk [vmem:[#allocation2 + $0x1a8] sm:$0xff] %vm243_vm0, %v341_v37  ;;  %375 = vst.msk [vmem:[#allocation2 + $0x1b0] sm:$0xff] %vm243_vm0, %v342_v38 }
  0x72   : > { %376 = vst.msk [vmem:[#allocation2 + $0x1c8] sm:$0xff] %vm243_vm0, %v343_v39  ;;  %377 = vst.msk [vmem:[#allocation2 + $0x1d0] sm:$0xff] %vm243_vm0, %v344_v40 }
  0x73   : > { %378 = vst.msk [vmem:[#allocation2 + $0x1e8] sm:$0xff] %vm243_vm0, %v345_v41  ;;  %379 = vst.msk [vmem:[#allocation2 + $0x1f0] sm:$0xff] %vm243_vm0, %v346_v42 }
  0x74   : > { %380 = vst.msk [vmem:[#allocation2 + $0x208] sm:$0xff] %vm243_vm0, %v347_v43  ;;  %381 = vst.msk [vmem:[#allocation2 + $0x210] sm:$0xff] %vm243_vm0, %v348_v44 }
  0x75 LB: >> { %v2542_v1 = vld [vmem:[#allocation9_spill] sm:$0xff]  ;;  %v2543_v3 = vld [vmem:[#allocation10_spill] sm:$0xff]  ;;  %v2544_v4 = vld [vmem:[#allocation11_spill] sm:$0xff]  ;;  %v423_v47 = vlaneseq  ;;  %s1192_s28 = sshll.u32 %s1446_s26, 8  ;;  %s1193_s29 = sshll.u32 %s1446_s26, 7  ;;  %vm1042_vm2 = vcmask 261120   ;;  %s1446_s26 = sphi %s1873_s26, %s399_s26  }
  0x76   : >> { %v1259_v45 = vpack.c.bf16 %v2544_v4, %v2543_v3  ;;  %v2545_v5 = vld [vmem:[#allocation12_spill] sm:$0xff]  ;;  %v2546_v6 = vld [vmem:[#allocation13_spill] sm:$0xff]  ;;  %v2547_v7 = vld [vmem:[#allocation14_spill] sm:$0xff]  ;;  %s1885_s25 = scalar_lea.vmem [#allocation2], %s1192_s28  ;;  %s2399_s12 = scalar_lea.vmem %s1871_s17, %s1193_s29 [#allocation6] }
  0x77   : >> { %v1263_v46 = vpack.c.bf16 %v2546_v6, %v2545_v5  ;;  %v424_v48 = vshrl.u32 %v423_v47, 7  ;;  %v2548_v8 = vld [vmem:[#allocation15_spill] sm:$0xff]  ;;  %v2549_v9 = vld [vmem:[#allocation16_spill] sm:$0xff]  ;;  %v2550_v10 = vld [vmem:[#allocation17_spill] sm:$0xff]  ;;  %s399_s26 = sadd.s32 1, %s1446_s26  }
  0x78   : >> { %1260 = vmatprep.subr.bf16.mxu0 %v1259_v45  ;;  %1275 = vmatprep.subr.bf16.mxu1 %v1259_v45  ;;  %v1267_v49 = vpack.c.bf16 %v2548_v8, %v2547_v7  ;;  %v1271_v62 = vpack.c.bf16 %v2550_v10, %v2549_v9  ;;  %p396_p6 = scmp.ge.s32.totalorder %s399_s26, 2  }
  0x79   : >> { %1262 = vmatpush3.bf16.msra.mxu0 %v1259_v45  ;;  %1279 = vmatpush3.bf16.msra.mxu1 %v1259_v45  ;;  %v425_v50 = vsub.s32 0, %v424_v48  ;;  %v461_v51 = vsub.s32 3, %v424_v48  ;;  %v497_v52 = vsub.s32 6, %v424_v48  ;;  %v553_v55 = vsub.s32 1, %v424_v48  ;;  %s1194_s14 = sshll.u32 (%p396_p6), %s1506_s22, 12  ;;  %s1073_s7 = sshll.u32 (%p396_p6), %s1871_s17, 4  ;;  %s2458_s7 = int_to_ptr.vmem [resolvable:$true] %s1073_s7 }
  0x7a   : >> { %1264 = vmatprep.subr.bf16.mxu0 %v1263_v46  ;;  %1276 = vmatprep.subr.bf16.mxu1 %v1263_v46  ;;  %v589_v56 = vsub.s32 4, %v424_v48  ;;  %v625_v57 = vsub.s32 7, %v424_v48  ;;  %v681_v13 = vsub.s32 2, %v424_v48  ;;  %v717_v17 = vsub.s32 5, %v424_v48  ;;  %s2455_s8 = scalar_lea.hbm (%p396_p6), %s2507_s5, %s1194_s14  ;;  %s1060_s9 = scalar_lea.sflag (%p396_p6), [#allocation5], %s1589_s23 }
  0x7b   : >> { %v403_v53 = vld [vmem:[%s1885_s25 + $0x7] sm:$0xff]  ;;  %v1891_v59 = vrot.slane %v2542_v1, %v425_v50  ;;  %v1894_v60 = vrot.slane %v2542_v1, %v461_v51  ;;  %v1897_v61 = vrot.slane %v2542_v1, %v497_v52  ;;  %v1903_v0 = vrot.slane %v2542_v1, %v553_v55  ;;  %v2046_v3 = vld [vmem:[%s1885_s25 + $0xaf] sm:$0xff]  ;;  %s1372_s10 = scalar_lea.vmem (%p396_p6), %s2458_s7, 4096  ;;  %p2580_p12 = scmp.ne.s32.totalorder (%p396_p6), %s2529_s30, 0 }
  0x7c   : >> { %v405_v54 = vld [vmem:[%s1885_s25 + $0x27] sm:$0xff]  ;;  %v1908_v16 = vrot.slane %v2542_v1, %v589_v56  ;;  %v1916_v21 = vrot.slane %v2542_v1, %v625_v57  ;;  %v1935_v31 = vrot.slane %v2542_v1, %v681_v13  ;;  %v1942_v35 = vrot.slane %v2542_v1, %v717_v17  ;;  %v2003_v17 = vld [vmem:[%s1885_s25 + $0x2f] sm:$0xff]  ;;  %p1373_p11 = scmp.ne.s32.totalorder (%p396_p6), %s2458_s7, %s1372_s10  ;;  %s1452_s11 = smov (%p396_p6), [#allocation6]  }
  0x7d   : >> { %1266 = vmatpush3.bf16.msra.mxu0 %v1263_v46  ;;  %1280 = vmatpush3.bf16.msra.mxu1 %v1263_v46  ;;  %v407_v58 = vld [vmem:[%s1885_s25 + $0x47] sm:$0xff]  ;;  %v427_v14 = vmul.f32 %v1891_v59, %v403_v53  ;;  %v463_v15 = vmul.f32 %v1894_v60, %v405_v54  ;;  %v1911_v18 = vmul.f32 %v1891_v59, %v405_v54  ;;  %v2043_v1 = vld [vmem:[%s1885_s25 + $0x8f] sm:$0xff]  ;;  %s1376_s13 = sshll.u32 (%p396_p6), %s1452_s11, 4  ;;  %s1377_s13 = int_to_ptr.vmem [resolvable:$false] %s1376_s13 }
  0x7e   : >> { %1268 = vmatprep.subr.bf16.mxu0 %v1267_v49  ;;  %1277 = vmatprep.subr.bf16.mxu1 %v1267_v49  ;;  %v531_v63 = vld [vmem:[%s1885_s25 + $0x8] sm:$0xff]  ;;  %v499_v19 = vmul.f32 %v1897_v61, %v407_v58  ;;  %v1919_v22 = vmul.f32 %v1891_v59, %v407_v58  ;;  %v1928_v28 = vmul.f32 %v1894_v60, %v407_v58  ;;  %v2057_v6 = vld [vmem:[%s1885_s25 + $0x31] sm:$0xff]  ;;  %p1374_p13 = pnand (%p396_p6), %p1373_p11, %p2580_p12  ;;  %s1378_s22 = scalar_lea.vmem (%p396_p6), %s1377_s13, 8192 }
  0x7f   : >> { %v533_v20 = vld [vmem:[%s1885_s25 + $0x28] sm:$0xff]  ;;  %v479_v23 = vadd.f32 %v463_v15, %v427_v14  ;;  %v555_v25 = vmul.f32 %v1903_v0, %v531_v63  ;;  %2562 = vst [vmem:[#allocation30_spill] sm:$0xff] %v2043_v1  ;;  %v2060_v7 = vld [vmem:[%s1885_s25 + $0x51] sm:$0xff]  ;;  %p1379_p10 = scmp.lt.s32.totalorder (%p396_p6), %s2458_s7, %s1377_s13  ;;  %p1380_p0 = scmp.lt.s32.totalorder (%p396_p6), %s1378_s22, %s1372_s10 }
  0x80   : >> { %2551 = vst [vmem:[#allocation19_spill] sm:$0xff] %v1919_v22  ;;  %v535_v24 = vld [vmem:[%s1885_s25 + $0x48] sm:$0xff]  ;;  %v1931_v29 = vmul.f32 %v1903_v0, %v533_v20  ;;  %v591_v34 = vmul.f32 %v1908_v16, %v533_v20  ;;  %v2066_v10 = vld [vmem:[%s1885_s25 + $0x90] sm:$0xff]  ;;  %p1375_p8 = pneg (%p396_p6), %p1374_p13 }
  0x81   : >> { %1270 = vmatpush3.bf16.msra.mxu0 %v1267_v49  ;;  %1281 = vmatpush3.bf16.msra.mxu1 %v1267_v49  ;;  %v663_v26 = vld [vmem:[%s1885_s25 + $0x49] sm:$0xff]  ;;  %v515_v32 = vadd.f32 %v499_v19, %v479_v23  ;;  %v1938_v33 = vmul.f32 %v1903_v0, %v535_v24  ;;  %v1949_v38 = vmul.f32 %v1908_v16, %v535_v24  ;;  %p1381_p2 = por (%p396_p6), %p1380_p0, %p1379_p10 }
  0x82   : >> { %v1925_v27 = vld [vmem:[%s1885_s25 + $0x87] sm:$0xff]  ;;  %1272 = vmatprep.subr.bf16.mxu0 %v1271_v62  ;;  %1278 = vmatprep.subr.bf16.mxu1 %v1271_v62  ;;  %v627_v39 = vmul.f32 %v1916_v21, %v535_v24  ;;  %v1954_v41 = vmul.f32 %v1753_v2, %v663_v26  ;;  %v1969_v48 = vmul.f32 %v1935_v31, %v663_v26  ;;  %v2006_v19 = vld [vmem:[%s1885_s25 + $0x4f] sm:$0xff] }
  0x83   : >> { %2552 = vst [vmem:[#allocation20_spill] sm:$0xff] %v1925_v27  ;;  %v659_v30 = vld [vmem:[%s1885_s25 + $0x9] sm:$0xff]  ;;  %2553 = vst [vmem:[#allocation21_spill] sm:$0xff] %v1938_v33  ;;  %v435_v42 = vmul.f32 %v1891_v59, %v1925_v27  ;;  %v571_v43 = vadd.f32 %v555_v25, %v515_v32  ;;  %v1985_v56 = vmul.f32 %v1942_v35, %v663_v26  ;;  %p1382_p4 = pnand (%p396_p6), %p1381_p2, %p1375_p8 }
  0x84   : >> { %v1945_v36 = vld [vmem:[%s1885_s25 + $0xa7] sm:$0xff]  ;;  %v683_v44 = vmul.f32 %v1935_v31, %v659_v30  ;;  %2557 = vst [vmem:[#allocation25_spill] sm:$0xff] %v1969_v48  ;;  %v532_v30 = vld [vmem:[%s1885_s25 + $0x10] sm:$0xff]  ;;  %2563 = vst [vmem:[#allocation31_spill] sm:$0xff] %v2066_v10 }
  0x85   : >> { %2554 = vst [vmem:[#allocation22_spill] sm:$0xff] %v1945_v36  ;;  %v415_v37 = vld [vmem:[%s1885_s25 + $0xc7] sm:$0xff]  ;;  %1274 = vmatpush3.bf16.msra.mxu0 %v1271_v62  ;;  %1282 = vmatpush3.bf16.msra.mxu1 %v1271_v62  ;;  %v471_v50 = vmul.f32 %v1894_v60, %v1945_v36  ;;  %v607_v54 = vadd.f32 %v591_v34, %v571_v43  ;;  %v404_v62 = vld [vmem:[%s1885_s25 + $0xf] sm:$0xff] }
  0x86   : >> { %v661_v40 = vld [vmem:[%s1885_s25 + $0x29] sm:$0xff]  ;;  %v1972_v49 = vmul.f32 %v1891_v59, %v415_v37  ;;  %v507_v51 = vmul.f32 %v1897_v61, %v415_v37  ;;  %v1988_v57 = vmul.f32 %v1894_v60, %v415_v37  ;;  %v660_v43 = vld [vmem:[%s1885_s25 + $0x11] sm:$0xff] }
  0x87   : >> { %v1960_v45 = vmul.f32 %v1935_v31, %v661_v40  ;;  %v1963_v46 = vld [vmem:[%s1885_s25 + $0x88] sm:$0xff]  ;;  %v719_v55 = vmul.f32 %v1942_v35, %v661_v40  ;;  %v487_v63 = vadd.f32 %v471_v50, %v435_v42  ;;  %v643_v20 = vadd.f32 %v627_v39, %v607_v54  ;;  %v2021_v32 = vld [vmem:[%s1885_s25 + $0x30] sm:$0xff] }
  0x88   : >> { %2555 = vst [vmem:[#allocation23_spill] sm:$0xff] %v1963_v46  ;;  %v1966_v47 = vld [vmem:[%s1885_s25 + $0xa8] sm:$0xff]  ;;  %2558 = vst [vmem:[#allocation26_spill] sm:$0xff] %v1972_v49  ;;  %v563_v13 = vmul.f32 %v1903_v0, %v1963_v46  ;;  %v428_v40 = vmul.f32 %v1891_v59, %v404_v62  ;;  %v2031_v42 = vld [vmem:[%s1885_s25 + $0x50] sm:$0xff]  ;;  %v592_v5 = vmul.f32 %v1908_v16, %v2021_v32 }
  0x89   : >> { %2556 = vst [vmem:[#allocation24_spill] sm:$0xff] %v1966_v47  ;;  %v1978_v52 = vld [vmem:[%s1885_s25 + $0xc8] sm:$0xff]  ;;  %v1998_v14 = vmul.f32 %v1903_v0, %v1966_v47  ;;  %v599_v15 = vmul.f32 %v1908_v16, %v1966_v47  ;;  %v523_v34 = vadd.f32 %v507_v51, %v487_v63  ;;  %v699_v50 = vadd.f32 %v683_v44, %v643_v20  ;;  %v2069_v12 = vld [vmem:[%s1885_s25 + $0xb0] sm:$0xff] }
  0x8a   : >> { %v1981_v53 = vld [vmem:[%s1885_s25 + $0x89] sm:$0xff]  ;;  %v2010_v23 = vmul.f32 %v1908_v16, %v1978_v52  ;;  %v635_v24 = vmul.f32 %v1916_v21, %v1978_v52  ;;  %v464_v51 = vmul.f32 %v1894_v60, %v2003_v17  ;;  %v500_v63 = vmul.f32 %v1897_v61, %v2006_v19 }
  0x8b   : >> { %2559 = vst [vmem:[#allocation27_spill] sm:$0xff] %v1981_v53  ;;  %v1991_v58 = vld [vmem:[%s1885_s25 + $0xa9] sm:$0xff]  ;;  %v691_v26 = vmul.f32 %v1935_v31, %v1981_v53  ;;  %v579_v4 = vadd.f32 %v563_v13, %v523_v34  ;;  %v556_v20 = vmul.f32 %v1903_v0, %v532_v30  ;;  %v735_v8 = vadd.f32 %v719_v55, %v699_v50 }
  0x8c   : >> { %2560 = vst [vmem:[#allocation28_spill] sm:$0xff] %v1991_v58  ;;  %v2015_v25 = vld [vmem:[%s1885_s25 + $0xc9] sm:$0xff]  ;;  %v2025_v37 = vmul.f32 %v1935_v31, %v1991_v58  ;;  %v727_v39 = vmul.f32 %v1942_v35, %v1991_v58  ;;  %v480_v9 = vadd.f32 %v464_v51, %v428_v40  ;;  %v628_v13 = vmul.f32 %v1916_v21, %v2031_v42  ;;  %v2081_v51 = vld [vmem:[%s1885_s25 + $0x91] sm:$0xff] }
  0x8d   : >> { %2561 = vst [vmem:[#allocation29_spill] sm:$0xff] %v2015_v25  ;;  %v2036_v54 = vmul.f32 %v1942_v35, %v2015_v25  ;;  %v2049_v62 = vld [vmem:[%s1885_s25 + $0xcf] sm:$0xff]  ;;  %v763_v44 = vmul.f32 %v1753_v2, %v2015_v25  ;;  %v684_v34 = vmul.f32 %v1935_v31, %v660_v43  ;;  %v615_v30 = vadd.f32 %v599_v15, %v579_v4  ;;  %v2089_v48 = vld [vmem:[%s1885_s25 + $0x67] sm:$0xff] }
  0x8e   : >> { %v436_v58 = vmul.f32 %v1891_v59, %v2043_v1  ;;  %v472_v55 = vmul.f32 %v1894_v60, %v2046_v3  ;;  %v508_v40 = vmul.f32 %v1897_v61, %v2049_v62  ;;  %v2078_v50 = vld [vmem:[%s1885_s25 + $0xd0] sm:$0xff]  ;;  %2564 = vst [vmem:[#allocation32_spill] sm:$0xff] %v2081_v51  ;;  %v771_v43 = vadd.f32 %v1954_v41, %v735_v8  ;;  %v2111_v22 = vld [vmem:[%s1885_s25 + $0x68] sm:$0xff] }
  0x8f   : >> { %v516_v47 = vadd.f32 %v500_v63, %v480_v9  ;;  %v720_v4 = vmul.f32 %v1942_v35, %v2057_v6  ;;  %v756_v15 = vmul.f32 %v1753_v2, %v2060_v7  ;;  %v651_v53 = vadd.f32 %v635_v24, %v615_v30  ;;  %v2096_v9 = vld [vmem:[%s1885_s25 + $0xb1] sm:$0xff]  ;;  %v2114_v25 = vld [vmem:[%s1885_s25 + $0x69] sm:$0xff] }
  0x90   : >> { %v488_v1 = vadd.f32 %v472_v55, %v436_v58  ;;  %v564_v49 = vmul.f32 %v1903_v0, %v2066_v10  ;;  %v600_v8 = vmul.f32 %v1908_v16, %v2069_v12  ;;  %v2099_v41 = vld [vmem:[%s1885_s25 + $0xd1] sm:$0xff]  ;;  %v793_v63 = vadd.f32 %v1798_v11, %v771_v43 }
  0x91   : >> { %v572_v33 = vadd.f32 %v556_v20, %v516_v47  ;;  %v636_v46 = vmul.f32 %v1916_v21, %v2078_v50  ;;  %v692_v24 = vmul.f32 %v1935_v31, %v2081_v51  ;;  %v707_v58 = vadd.f32 %v691_v26, %v651_v53  ;;  %v2117_v47 = vld [vmem:[%s1885_s25 + $0xe7] sm:$0xff] }
  0x92   : >> { %v524_v30 = vadd.f32 %v508_v40, %v488_v1  ;;  %v481_v55 = vadd.f32 %v1928_v28, %v1911_v18  ;;  %v501_v10 = vmul.f32 %v1897_v61, %v2089_v48  ;;  %v809_v20 = vmax.f32 %v793_v63, 0.0  ;;  %v2126_v40 = vld [vmem:[%s1885_s25 + $0x6f] sm:$0xff] }
  0x93   : >> { %v608_v43 = vadd.f32 %v592_v5, %v572_v33  ;;  %v728_v51 = vmul.f32 %v1942_v35, %v2096_v9  ;;  %v764_v1 = vmul.f32 %v1753_v2, %v2099_v41  ;;  %v743_v53 = vadd.f32 %v727_v39, %v707_v58 }
  0x94   : >> { %v580_v18 = vadd.f32 %v564_v49, %v524_v30  ;;  %v517_v28 = vadd.f32 %v501_v10, %v481_v55  ;;  %v437_v26 = vmul.f32 %v1891_v59, %v1945_v36  ;;  %1235 = vmatprep.mubr.msk.f32.mxu0 %vm243_vm0, %v809_v20  ;;  %v629_v5 = vmul.f32 %v1916_v21, %v2111_v22  ;;  %v2138_v30 = vld [vmem:[%s1885_s25 + $0xe8] sm:$0xff] }
  0x95   : >> { %v644_v27 = vadd.f32 %v628_v13, %v608_v43  ;;  %v757_v33 = vmul.f32 %v1753_v2, %v2114_v25  ;;  %v509_v39 = vmul.f32 %v1897_v61, %v2117_v47  ;;  %v779_v49 = vadd.f32 %v763_v44, %v743_v53 }
  0x96   : >> { %v616_v10 = vadd.f32 %v600_v8, %v580_v18  ;;  %v573_v63 = vadd.f32 %v1931_v29, %v517_v28  ;;  %v489_v58 = vadd.f32 %v1988_v57, %v437_v26  ;;  %v430_v55 = vmul.f32 %v1891_v59, %v2003_v17  ;;  %v2149_v18 = vld [vmem:[%s1885_s25 + $0xe9] sm:$0xff] }
  0x97   : >> { %v700_v13 = vadd.f32 %v684_v34, %v644_v27  ;;  %v466_v20 = vmul.f32 %v1894_v60, %v2006_v19  ;;  %v502_v43 = vmul.f32 %v1897_v61, %v2126_v40  ;;  %v801_v44 = vadd.f32 %v1798_v11, %v779_v49  ;;  %v2154_v17 = vld [vmem:[%s1885_s25 + $0x70] sm:$0xff] }
  0x98   : >> { %v652_v8 = vadd.f32 %v636_v46, %v616_v10  ;;  %v609_v53 = vadd.f32 %v1949_v38, %v573_v63  ;;  %v525_v29 = vadd.f32 %v509_v39, %v489_v58  ;;  %v637_v27 = vmul.f32 %v1916_v21, %v2138_v30 }
  0x99   : >> { %v736_v57 = vadd.f32 %v720_v4, %v700_v13  ;;  %v482_v34 = vadd.f32 %v466_v20, %v430_v55  ;;  %v558_v28 = vmul.f32 %v1903_v0, %v2021_v32  ;;  %v817_v26 = vmax.f32 %v801_v44, 0.0 }
  0x9a   : >> { %v708_v36 = vadd.f32 %v692_v24, %v652_v8  ;;  %v645_v49 = vadd.f32 %v629_v5, %v609_v53  ;;  %v581_v46 = vadd.f32 %v1998_v14, %v525_v29  ;;  %v765_v39 = vmul.f32 %v1753_v2, %v2149_v18  ;;  %v2169_v5 = vld [vmem:[%s1885_s25 + $0xef] sm:$0xff] }
  0x9b   : >> { %v772_v38 = vadd.f32 %v756_v15, %v736_v57  ;;  %v518_v4 = vadd.f32 %v502_v43, %v482_v34  ;;  %v594_v10 = vmul.f32 %v1908_v16, %v2031_v42  ;;  %1247 = vmatprep.mubr.msk.f32.mxu1 %vm243_vm0, %v817_v26  ;;  %v630_v24 = vmul.f32 %v1916_v21, %v2154_v17  ;;  %v2189_v57 = vld [vmem:[%s1885_s25 + $0xf0] sm:$0xff] }
  0x9c   : >> { %v744_v63 = vadd.f32 %v728_v51, %v708_v36  ;;  %v701_v58 = vadd.f32 %v1960_v45, %v645_v49  ;;  %v617_v32 = vadd.f32 %v2010_v23, %v581_v46  ;;  %v686_v13 = vmul.f32 %v1935_v31, %v2057_v6 }
  0x9d   : >> { %v794_v14 = vadd.f32 %v1798_v11, %v772_v38  ;;  %v574_v15 = vadd.f32 %v558_v28, %v518_v4  ;;  %v438_v36 = vmul.f32 %v1891_v59, %v2046_v3  ;;  %v474_v55 = vmul.f32 %v1894_v60, %v2049_v62 }
  0x9e   : >> { %v780_v51 = vadd.f32 %v764_v1, %v744_v63  ;;  %v737_v45 = vadd.f32 %v1985_v56, %v701_v58  ;;  %v653_v23 = vadd.f32 %v637_v27, %v617_v32  ;;  %v510_v44 = vmul.f32 %v1897_v61, %v2169_v5  ;;  %v2186_v1 = vld [vmem:[%s1885_s25 + $0x71] sm:$0xff] }
  0x9f   : >> { %v810_v20 = vmax.f32 %v794_v14, 0.0  ;;  %v610_v43 = vadd.f32 %v594_v10, %v574_v15  ;;  %v566_v8 = vmul.f32 %v1903_v0, %v2069_v12  ;;  %v490_v56 = vadd.f32 %v474_v55, %v438_v36  ;;  %v2566_v15 = vld [vmem:[#allocation29_spill] sm:$0xff] }
  0xa0   : >> { %v802_v6 = vadd.f32 %v1798_v11, %v780_v51  ;;  %v773_v53 = vadd.f32 %v757_v33, %v737_v45  ;;  %v709_v29 = vadd.f32 %v2025_v37, %v653_v23  ;;  %v567_v27 = vmul.f32 %v1903_v0, %v1978_v52  ;;  %v2217_v51 = vld [vmem:[%s1885_s25 + $0xf1] sm:$0xff] }
  0xa1   : >> { %1236 = vmatmul.mubr.msk.f32.vlgmr.msra.gmra.mrb[0].mxu0 %vm243_vm0, %v810_v20  ;;  %v646_v34 = vadd.f32 %v630_v24, %v610_v43  ;;  %v722_v28 = vmul.f32 %v1942_v35, %v2060_v7  ;;  %v602_v33 = vmul.f32 %v1908_v16, %v2078_v50  ;;  %v526_v46 = vadd.f32 %v510_v44, %v490_v56  ;;  %v2565_v24 = vld [vmem:[#allocation20_spill] sm:$0xff]  ;;  %v2567_v23 = vld [vmem:[#allocation19_spill] sm:$0xff] }
  0xa2   : >> { %v818_v26 = vmax.f32 %v802_v6, 0.0  ;;  %v795_v37 = vadd.f32 %v1798_v11, %v773_v53  ;;  %v745_v49 = vadd.f32 %v2036_v54, %v709_v29  ;;  %v758_v52 = vmul.f32 %v1753_v2, %v2186_v1  ;;  %v2210_v54 = vld [vmem:[%s1885_s25 + $0x107] sm:$0xff] }
  0xa3   : >> { %v702_v38 = vadd.f32 %v686_v13, %v646_v34  ;;  %v638_v4 = vmul.f32 %v1916_v21, %v2189_v57  ;;  %v467_v10 = vmul.f32 %v1894_v60, %v2089_v48  ;;  %v582_v32 = vadd.f32 %v566_v8, %v526_v46 }
  0xa4   : >> { %1248 = vmatmul.mubr.msk.f32.vlgmr.msra.gmra.mrb[0].mxu1 %vm243_vm0, %v818_v26  ;;  %v811_v63 = vmax.f32 %v795_v37, 0.0  ;;  %v781_v58 = vadd.f32 %v765_v39, %v745_v49  ;;  %v503_v14 = vmul.f32 %v1897_v61, %v2565_v24  ;;  %v2214_v13 = vmul.f32 %v1935_v31, %v2566_v15  ;;  %v2569_v49 = vld [vmem:[#allocation21_spill] sm:$0xff] }
  0xa5   : >> { %v738_v36 = vadd.f32 %v722_v28, %v702_v38  ;;  %v694_v45 = vmul.f32 %v1935_v31, %v2096_v9  ;;  %v483_v55 = vadd.f32 %v467_v10, %v2567_v23  ;;  %v618_v20 = vadd.f32 %v602_v33, %v582_v32  ;;  %v2568_v33 = vld [vmem:[#allocation23_spill] sm:$0xff] }
  0xa6   : >> { %1238 = vmatprep.mubr.msk.f32.mxu0 %vm243_vm0, %v811_v63  ;;  %v803_v39 = vadd.f32 %v1798_v11, %v781_v58  ;;  %v730_v43 = vmul.f32 %v1942_v35, %v2099_v41  ;;  %v595_v44 = vmul.f32 %v1908_v16, %v2111_v22  ;;  %v475_v53 = vmul.f32 %v1894_v60, %v2117_v47 }
  0xa7   : >> { %v774_v8 = vadd.f32 %v758_v52, %v738_v36  ;;  %v519_v6 = vadd.f32 %v503_v14, %v483_v55  ;;  %v511_v29 = vmul.f32 %v1897_v61, %v2210_v54  ;;  %v654_v34 = vadd.f32 %v638_v4, %v618_v20  ;;  %v2570_v52 = vld [vmem:[#allocation26_spill] sm:$0xff] }
  0xa8   : >> { %v819_v56 = vmax.f32 %v803_v39, 0.0  ;;  %v766_v28 = vmul.f32 %v1753_v2, %v2217_v51  ;;  %v631_v26 = vmul.f32 %v1916_v21, %v2568_v33  ;;  %v723_v38 = vmul.f32 %v1942_v35, %v2114_v25  ;;  %v2243_v4 = vld [vmem:[%s1885_s25 + $0x108] sm:$0xff] }
  0xa9   : >> { %v796_v37 = vadd.f32 %v1798_v11, %v774_v8  ;;  %v575_v46 = vadd.f32 %v2569_v49, %v519_v6  ;;  %v491_v10 = vadd.f32 %v475_v53, %v2570_v52  ;;  %v710_v63 = vadd.f32 %v694_v45, %v654_v34  ;;  %v2252_v55 = vld [vmem:[%s1885_s25 + $0x109] sm:$0xff]  ;;  %v2573_v52 = vld [vmem:[#allocation25_spill] sm:$0xff] }
  0xaa   : >> { %1250 = vmatprep.mubr.msk.f32.mxu1 %vm243_vm0, %v819_v56  ;;  %v603_v58 = vmul.f32 %v1908_v16, %v2138_v30  ;;  %v432_v32 = vmul.f32 %v1891_v59, %v2006_v19  ;;  %v468_v14 = vmul.f32 %v1894_v60, %v2126_v40  ;;  %v2571_v39 = vld [vmem:[#allocation30_spill] sm:$0xff]  ;;  %v2572_v8 = vld [vmem:[#allocation27_spill] sm:$0xff]  ;;  %v560_v19 = vmul.f32 %v1903_v0, %v2031_v42 }
  0xab   : >> { %v812_v15 = vmax.f32 %v796_v37, 0.0  ;;  %v611_v36 = vadd.f32 %v595_v44, %v575_v46  ;;  %v527_v23 = vadd.f32 %v511_v29, %v491_v10  ;;  %v504_v45 = vmul.f32 %v1897_v61, %v2571_v39  ;;  %v2266_v37 = vld [vmem:[%s1885_s25 + $0x10f] sm:$0xff] }
  0xac   : >> { %v746_v20 = vadd.f32 %v730_v43, %v710_v63  ;;  %v759_v6 = vmul.f32 %v1753_v2, %v2572_v8  ;;  %v484_v53 = vadd.f32 %v468_v14, %v432_v32  ;;  %v639_v44 = vmul.f32 %v1916_v21, %v2243_v4 }
  0xad   : >> { %1239 = vmatmul.mubr.msk.f32.gmra.mrb[2].mxu0 %vm243_vm0, %v812_v15  ;;  %v647_v56 = vadd.f32 %v631_v26, %v611_v36  ;;  %v583_v34 = vadd.f32 %v567_v27, %v527_v23  ;;  %v731_v29 = vmul.f32 %v1942_v35, %v2149_v18  ;;  %v767_v49 = vmul.f32 %v1753_v2, %v2252_v55 }
  0xae   : >> { %v782_v43 = vadd.f32 %v766_v28, %v746_v20  ;;  %v520_v46 = vadd.f32 %v504_v45, %v484_v53  ;;  %v596_v42 = vmul.f32 %v1908_v16, %v2154_v17  ;;  %v440_v10 = vmul.f32 %v1891_v59, %v2049_v62  ;;  %v2574_v28 = vld [vmem:[#allocation31_spill] sm:$0xff] }
  0xaf   : >> { %v703_v26 = vadd.f32 %v2573_v52, %v647_v56  ;;  %v619_v27 = vadd.f32 %v603_v58, %v583_v34  ;;  %v476_v63 = vmul.f32 %v1894_v60, %v2169_v5  ;;  %v632_v15 = vmul.f32 %v1916_v21, %v2574_v28  ;;  %v2283_v53 = vld [vmem:[%s1885_s25 + $0x110] sm:$0xff] }
  0xb0   : >> { %v804_v32 = vadd.f32 %v1798_v11, %v782_v43  ;;  %v576_v14 = vadd.f32 %v560_v19, %v520_v46  ;;  %v512_v36 = vmul.f32 %v1897_v61, %v2266_v37  ;;  %v568_v62 = vmul.f32 %v1903_v0, %v2078_v50 }
  0xb1   : >> { %v739_v23 = vadd.f32 %v723_v38, %v703_v26  ;;  %v655_v45 = vadd.f32 %v639_v44, %v619_v27  ;;  %v492_v20 = vadd.f32 %v476_v63, %v440_v10  ;;  %v688_v34 = vmul.f32 %v1935_v31, %v2060_v7  ;;  %v2575_v27 = vld [vmem:[#allocation22_spill] sm:$0xff] }
  0xb2   : >> { %v820_v58 = vmax.f32 %v804_v32, 0.0  ;;  %v612_v56 = vadd.f32 %v596_v42, %v576_v14  ;;  %v724_v19 = vmul.f32 %v1942_v35, %v2186_v1  ;;  %v604_v38 = vmul.f32 %v1908_v16, %v2189_v57  ;;  %v2576_v32 = vld [vmem:[#allocation32_spill] sm:$0xff] }
  0xb3   : >> { %v775_v43 = vadd.f32 %v759_v6, %v739_v23  ;;  %v711_v46 = vadd.f32 %v2214_v13, %v655_v45  ;;  %v528_v52 = vadd.f32 %v512_v36, %v492_v20  ;;  %v640_v50 = vmul.f32 %v1916_v21, %v2283_v53  ;;  %v421_v20 = vld [vmem:[%s1885_s25 + $0x127] sm:$0xff] }
  0xb4   : >> { %1251 = vmatmul.mubr.msk.f32.gmra.mrb[2].mxu1 %vm243_vm0, %v820_v58  ;;  %v648_v44 = vadd.f32 %v632_v15, %v612_v56  ;;  %v433_v7 = vmul.f32 %v1891_v59, %v2089_v48  ;;  %v469_v6 = vmul.f32 %v1894_v60, %v2565_v24  ;;  %v505_v10 = vmul.f32 %v1897_v61, %v2575_v27 }
  0xb5   : >> { %v797_v13 = vadd.f32 %v1798_v11, %v775_v43  ;;  %v747_v42 = vadd.f32 %v731_v29, %v711_v46  ;;  %v584_v26 = vadd.f32 %v568_v62, %v528_v52  ;;  %v760_v14 = vmul.f32 %v1753_v2, %v2576_v32  ;;  %v2312_v62 = vld [vmem:[%s1885_s25 + $0x111] sm:$0xff] }
  0xb6   : >> { %v704_v63 = vadd.f32 %v688_v34, %v648_v44  ;;  %v485_v15 = vadd.f32 %v469_v6, %v433_v7  ;;  %v561_v36 = vmul.f32 %v1903_v0, %v2111_v22  ;;  %v696_v24 = vmul.f32 %v1935_v31, %v2099_v41  ;;  %v2577_v43 = vld [vmem:[#allocation24_spill] sm:$0xff] }
  0xb7   : >> { %v813_v48 = vmax.f32 %v797_v13, 0.0  ;;  %v783_v23 = vadd.f32 %v767_v49, %v747_v42  ;;  %v620_v45 = vadd.f32 %v604_v38, %v584_v26  ;;  %v732_v58 = vmul.f32 %v1942_v35, %v2217_v51 }
  0xb8   : >> { %v740_v29 = vadd.f32 %v724_v19, %v704_v63  ;;  %v521_v56 = vadd.f32 %v505_v10, %v485_v15  ;;  %v597_v34 = vmul.f32 %v1908_v16, %v2568_v33  ;;  %v633_v46 = vmul.f32 %v1916_v21, %v2577_v43  ;;  %v549_v10 = vld [vmem:[%s1885_s25 + $0x128] sm:$0xff] }
  0xb9   : >> { %1241 = vmatprep.mubr.msk.f32.mxu0 %vm243_vm0, %v813_v48  ;;  %v805_v22 = vadd.f32 %v1798_v11, %v783_v23  ;;  %v656_v49 = vadd.f32 %v640_v50, %v620_v45  ;;  %v441_v41 = vmul.f32 %v1891_v59, %v2117_v47  ;;  %v477_v38 = vmul.f32 %v1894_v60, %v2210_v54  ;;  %v2578_v45 = vld [vmem:[#allocation28_spill] sm:$0xff] }
  0xba   : >> { %v776_v19 = vadd.f32 %v760_v14, %v740_v29  ;;  %v577_v52 = vadd.f32 %v561_v36, %v521_v56  ;;  %v513_v44 = vmul.f32 %v1897_v61, %v421_v20  ;;  %v768_v6 = vmul.f32 %v1753_v2, %v2312_v62  ;;  %v422_v29 = vld [vmem:[%s1885_s25 + $0x12f] sm:$0xff] }
  0xbb   : >> { %v821_v33 = vmax.f32 %v805_v22, 0.0  ;;  %v712_v7 = vadd.f32 %v696_v24, %v656_v49  ;;  %v689_v50 = vmul.f32 %v1935_v31, %v2114_v25  ;;  %v493_v47 = vadd.f32 %v477_v38, %v441_v41 }
  0xbc   : >> { %v798_v13 = vadd.f32 %v1798_v11, %v776_v19  ;;  %v613_v42 = vadd.f32 %v597_v34, %v577_v52  ;;  %v569_v26 = vmul.f32 %v1903_v0, %v2138_v30  ;;  %v725_v27 = vmul.f32 %v1942_v35, %v2572_v8 }
  0xbd   : >> { %1253 = vmatprep.mubr.msk.f32.mxu1 %vm243_vm0, %v821_v33  ;;  %v748_v54 = vadd.f32 %v732_v58, %v712_v7  ;;  %v605_v63 = vmul.f32 %v1908_v16, %v2243_v4  ;;  %v529_v15 = vadd.f32 %v513_v44, %v493_v47  ;;  %v434_v36 = vmul.f32 %v1891_v59, %v2126_v40 }
  0xbe   : >> { %v814_v14 = vmax.f32 %v798_v13, 0.0  ;;  %v649_v25 = vadd.f32 %v633_v46, %v613_v42  ;;  %v470_v30 = vmul.f32 %v1894_v60, %v2571_v39  ;;  %v506_v23 = vmul.f32 %v1897_v61, %v2046_v3  ;;  %v677_v46 = vld [vmem:[%s1885_s25 + $0x129] sm:$0xff] }
  0xbf   : >> { %v784_v48 = vadd.f32 %v768_v6, %v748_v54  ;;  %v761_v4 = vmul.f32 %v1753_v2, %v2578_v45  ;;  %v585_v24 = vadd.f32 %v569_v26, %v529_v15  ;;  %v641_v20 = vmul.f32 %v1916_v21, %v549_v10  ;;  %v678_v10 = vld [vmem:[%s1885_s25 + $0x131] sm:$0xff] }
  0xc0   : >> { %1242 = vmatmul.mubr.msk.f32.gmra.mrb[4].mxu0 %vm243_vm0, %v814_v14  ;;  %v705_v8 = vadd.f32 %v689_v50, %v649_v25  ;;  %v697_v58 = vmul.f32 %v1935_v31, %v2149_v18  ;;  %v486_v39 = vadd.f32 %v470_v30, %v434_v36  ;;  %v562_v3 = vmul.f32 %v1903_v0, %v2154_v17 }
  0xc1   : >> { %v806_v40 = vadd.f32 %v1798_v11, %v784_v48  ;;  %v621_v34 = vadd.f32 %v605_v63, %v585_v24  ;;  %v598_v22 = vmul.f32 %v1908_v16, %v2574_v28  ;;  %v442_v49 = vmul.f32 %v1891_v59, %v2169_v5 }
  0xc2   : >> { %v741_v56 = vadd.f32 %v725_v27, %v705_v8  ;;  %v522_v41 = vadd.f32 %v506_v23, %v486_v39  ;;  %v478_v19 = vmul.f32 %v1894_v60, %v2266_v37  ;;  %v514_v18 = vmul.f32 %v1897_v61, %v422_v29  ;;  %v550_v37 = vld [vmem:[%s1885_s25 + $0x130] sm:$0xff] }
  0xc3   : >> { %v822_v43 = vmax.f32 %v806_v40, 0.0  ;;  %v657_v38 = vadd.f32 %v641_v20, %v621_v34  ;;  %v733_v17 = vmul.f32 %v1942_v35, %v2252_v55  ;;  %v634_v59 = vmul.f32 %v1916_v21, %v2069_v12 }
  0xc4   : >> { %v777_v52 = vadd.f32 %v761_v4, %v741_v56  ;;  %v578_v28 = vadd.f32 %v562_v3, %v522_v41  ;;  %v494_v5 = vadd.f32 %v478_v19, %v442_v49  ;;  %v570_v44 = vmul.f32 %v1903_v0, %v2189_v57 }
  0xc5   : >> { %1254 = vmatmul.mubr.msk.f32.gmra.mrb[4].mxu1 %vm243_vm0, %v822_v43  ;;  %v713_v60 = vadd.f32 %v697_v58, %v657_v38  ;;  %v769_v61 = vmul.f32 %v1753_v2, %v677_v46  ;;  %v690_v55 = vmul.f32 %v1935_v31, %v2186_v1  ;;  %v606_v50 = vmul.f32 %v1908_v16, %v2283_v53 }
  0xc6   : >> { %v799_v33 = vadd.f32 %v1798_v11, %v777_v52  ;;  %v614_v7 = vadd.f32 %v598_v22, %v578_v28  ;;  %v530_v6 = vadd.f32 %v514_v18, %v494_v5  ;;  %v726_v0 = vmul.f32 %v1942_v35, %v2576_v32 }
  0xc7   : >> { %v749_v13 = vadd.f32 %v733_v17, %v713_v60  ;;  %v642_v47 = vmul.f32 %v1916_v21, %v550_v37  ;;  %v762_v1 = vmul.f32 %v1753_v2, %v2096_v9  ;;  %v698_v16 = vmul.f32 %v1935_v31, %v2217_v51 }
  0xc8   : >> { %v815_v12 = vmax.f32 %v799_v33, 0.0  ;;  %v650_v42 = vadd.f32 %v634_v59, %v614_v7  ;;  %v586_v57 = vadd.f32 %v570_v44, %v530_v6  ;;  %v734_v21 = vmul.f32 %v1942_v35, %v2312_v62  ;;  %v2579_v62 = vld [vmem:[#allocation18_spill] sm:$0xff] }
  0xc9   : >> { %v785_v26 = vadd.f32 %v769_v61, %v749_v13  ;;  %v770_v36 = vmul.f32 %v1753_v2, %v678_v10 }
  0xca   : >> { %1244 = vmatprep.mubr.msk.f32.mxu0 %vm243_vm0, %v815_v12  ;;  %v706_v54 = vadd.f32 %v690_v55, %v650_v42  ;;  %v622_v27 = vadd.f32 %v606_v50, %v586_v57 }
  0xcb   : >> { %v807_v53 = vadd.f32 %v1798_v11, %v785_v26 }
  0xcc   : >> { %v742_v63 = vadd.f32 %v726_v0, %v706_v54  ;;  %v658_v32 = vadd.f32 %v642_v47, %v622_v27 }
  0xcd   : >> { %v823_v14 = vmax.f32 %v807_v53, 0.0 }
  0xce   : >> { %v778_v25 = vadd.f32 %v762_v1, %v742_v63  ;;  %v714_v15 = vadd.f32 %v698_v16, %v658_v32 }
  0xcf   : >> { %1256 = vmatprep.mubr.msk.f32.mxu1 %vm243_vm0, %v823_v14 }
  0xd0   : >> { %v800_v9 = vadd.f32 %v1798_v11, %v778_v25  ;;  %v750_v31 = vadd.f32 %v734_v21, %v714_v15 }
  0xd2   : >> { %v816_v51 = vmax.f32 %v800_v9, 0.0  ;;  %v786_v48 = vadd.f32 %v770_v36, %v750_v31 }
  0xd4   : >> { %1245 = vmatmul.mubr.msk.f32.gmra.mrb[6].mxu0 %vm243_vm0, %v816_v51  ;;  %v808_v30 = vadd.f32 %v1798_v11, %v786_v48 }
  0xd6   : >> { %v824_v23 = vmax.f32 %v808_v30, 0.0 }
  0xd8   : >> { %1257 = vmatmul.mubr.msk.f32.gmra.mrb[6].mxu1 %vm243_vm0, %v824_v23 }
 0x174   : >> { %v1237_v35 = vpop.f32.mrb[0].mxu0 }
 0x175   : >> { %v951_v8 = vadd.f32 %v1237_v35, %v2579_v62  ;;  %v945_v45 = vpop.f32.mrb[1].mxu0 }
 0x176   : >> { %v946_v4 = vadd.f32 %v2579_v62, %v945_v45 }
 0x177   : >> { %v1025_v24 = vmax.f32 %v951_v8, 0.0  ;;  %v1249_v20 = vpop.f32.mrb[0].mxu1 }
 0x178   : >> { %v991_v29 = vadd.f32 %v1249_v20, %v2579_v62  ;;  %v1024_v40 = vmax.f32 %v946_v4, 0.0  ;;  %v985_v58 = vpop.f32.mrb[1].mxu1 }
 0x179   : >> { %1044 = vst.msk [vmem:[%s2399_s12 + $0x8] sm:$0xff] %vm1042_vm2, %v1025_v24  ;;  %v986_v39 = vadd.f32 %v2579_v62, %v985_v58 }
 0x17a   : >> { %v1033_v3 = vmax.f32 %v991_v29, 0.0  ;;  %1043 = vst.msk [vmem:[%s2399_s12] sm:$0xff] %vm1042_vm2, %v1024_v40 }
 0x17b   : >> { %v1032_v56 = vmax.f32 %v986_v39, 0.0 }
 0x17c   : >> { %1052 = vst.msk [vmem:[%s2399_s12 + $0x48] sm:$0xff] %vm1042_vm2, %v1033_v3 }
 0x17d   : >> { %1051 = vst.msk [vmem:[%s2399_s12 + $0x40] sm:$0xff] %vm1042_vm2, %v1032_v56 }
 0x180   : >> { %v1240_v34 = vpop.f32.mrb[2].mxu0 }
 0x181   : >> { %v961_v22 = vadd.f32 %v1240_v34, %v2579_v62  ;;  %v955_v49 = vpop.f32.mrb[3].mxu0 }
 0x182   : >> { %v956_v43 = vadd.f32 %v2579_v62, %v955_v49 }
 0x183   : >> { %v1027_v46 = vmax.f32 %v961_v22, 0.0 }
 0x184   : >> { %v1026_v41 = vmax.f32 %v956_v43, 0.0 }
 0x185   : >> { %1046 = vst.msk [vmem:[%s2399_s12 + $0x18] sm:$0xff] %vm1042_vm2, %v1027_v46 }
 0x186   : >> { %1045 = vst.msk [vmem:[%s2399_s12 + $0x10] sm:$0xff] %vm1042_vm2, %v1026_v41 }
 0x187   : >> { %v1252_v19 = vpop.f32.mrb[2].mxu1 }
 0x188   : >> { %v1001_v18 = vadd.f32 %v1252_v19, %v2579_v62  ;;  %v995_v52 = vpop.f32.mrb[3].mxu1 }
 0x189   : >> { %v996_v38 = vadd.f32 %v2579_v62, %v995_v52 }
 0x18a   : >> { %v1035_v17 = vmax.f32 %v1001_v18, 0.0 }
 0x18b   : >> { %v1034_v28 = vmax.f32 %v996_v38, 0.0 }
 0x18c   : >> { %1054 = vst.msk [vmem:[%s2399_s12 + $0x58] sm:$0xff] %vm1042_vm2, %v1035_v17 }
 0x18d   : >> { %1053 = vst.msk [vmem:[%s2399_s12 + $0x50] sm:$0xff] %vm1042_vm2, %v1034_v28 }
 0x193   : >> { %v1243_v59 = vpop.f32.mrb[4].mxu0 }
 0x194   : >> { %v971_v5 = vadd.f32 %v1243_v59, %v2579_v62  ;;  %v965_v44 = vpop.f32.mrb[5].mxu0 }
 0x195   : >> { %v966_v33 = vadd.f32 %v2579_v62, %v965_v44 }
 0x196   : >> { %v1029_v60 = vmax.f32 %v971_v5, 0.0 }
 0x197   : >> { %v1028_v61 = vmax.f32 %v966_v33, 0.0 }
 0x198   : >> { %1048 = vst.msk [vmem:[%s2399_s12 + $0x28] sm:$0xff] %vm1042_vm2, %v1029_v60  ;;  %v1255_v37 = vpop.f32.mrb[4].mxu1 }
 0x199   : >> { %v1011_v7 = vadd.f32 %v1255_v37, %v2579_v62  ;;  %1047 = vst.msk [vmem:[%s2399_s12 + $0x20] sm:$0xff] %vm1042_vm2, %v1028_v61  ;;  %v1005_v55 = vpop.f32.mrb[5].mxu1 }
 0x19a   : >> { %v1006_v6 = vadd.f32 %v2579_v62, %v1005_v55 }
 0x19b   : >> { %v1037_v50 = vmax.f32 %v1011_v7, 0.0 }
 0x19c   : >> { %v1036_v12 = vmax.f32 %v1006_v6, 0.0 }
 0x19d   : >> { %1056 = vst.msk [vmem:[%s2399_s12 + $0x68] sm:$0xff] %vm1042_vm2, %v1037_v50 }
 0x19e   : >> { %1055 = vst.msk [vmem:[%s2399_s12 + $0x60] sm:$0xff] %vm1042_vm2, %v1036_v12 }
 0x1a7   : >> { %v1246_v13 = vpop.f32.mrb[6].mxu0 }
 0x1a8   : >> { %v981_v42 = vadd.f32 %v1246_v13, %v2579_v62  ;;  %v975_v0 = vpop.f32.mrb[7].mxu0 }
 0x1a9   : >> { %v976_v57 = vadd.f32 %v2579_v62, %v975_v0 }
 0x1aa   : >> { %v1031_v47 = vmax.f32 %v981_v42, 0.0 }
 0x1ab   : >> { %v1258_v26 = vpop.f32.mrb[6].mxu1  ;;  %v1030_v54 = vmax.f32 %v976_v57, 0.0  ;;  %398 = sbr.rel (!%p396_p6) target bundleno = 117 (0x75), region = 95 }
 0x1ac   : >> { %1050 = vst.msk [vmem:[%s2399_s12 + $0x38] sm:$0xff] %vm1042_vm2, %v1031_v47  ;;  %v1021_v1 = vadd.f32 %v1258_v26, %v2579_v62  ;;  %v1015_v27 = vpop.f32.mrb[7].mxu1 }
 0x1ad   : >> { %1049 = vst.msk [vmem:[%s2399_s12 + $0x30] sm:$0xff] %vm1042_vm2, %v1030_v54  ;;  %v1016_v16 = vadd.f32 %v2579_v62, %v1015_v27 }
 0x1ae   : >> { %v1039_v53 = vmax.f32 %v1021_v1, 0.0 }
 0x1af   : >> { %v1038_v10 = vmax.f32 %v1016_v16, 0.0 }
 0x1b0   : >> { %1058 = vst.msk [vmem:[%s2399_s12 + $0x78] sm:$0xff] %vm1042_vm2, %v1039_v53 }
 0x1b1   : >> { %1057 = vst.msk [vmem:[%s2399_s12 + $0x70] sm:$0xff] %vm1042_vm2, %v1038_v10 }
 0x1b2   : > { %1385 = shalt.err (!%p1382_p4)
}
 0x1b3   : > { %s1386_s17 = scalar_lea.hbm %s2455_s8, 4096  ;;  %s1390_s25 = scalar_lea.hbm %s2507_s5, 8192 }
 0x1b4   : > { %p1387_p5 = scmp.ne.s32.totalorder %s2455_s8, %s1386_s17  ;;  %p1391_p1 = scmp.lt.u32.totalorder %s2455_s8, %s2507_s5 }
 0x1b5   : > { %p1392_p3 = scmp.lt.u32.totalorder %s1390_s25, %s1386_s17  ;;  %p1394_p11 = scmp.lt.u32.totalorder %s1386_s17, %s2455_s8 }
 0x1b6   : > { %p1388_p7 = pnand %p1387_p5, %p2580_p12 }
 0x1b7   : > { %p1393_p6 = por %p1392_p3, %p1391_p1 }
 0x1b8   : > { %p1389_p9 = pneg %p1388_p7 }
 0x1b9   : > { %p1395_p13 = por %p1394_p11, %p1393_p6 }
 0x1bb   : > { %p1396_p8 = pnand %p1395_p13, %p1389_p9 }
 0x1bd   : > { %1399 = shalt.err (!%p1396_p8)
}
 0x1be   : > { %s1453_s14 = smov 128   ;;  %s1454_s15 = smov 8  }
 0x1bf   : > { %1285 = dma.vmem_to_hbm [thread:$0]  (%p2580_p12), %s2458_s7, 4096, %s2455_s8, %s1060_s9, %s1453_s14, %s1453_s14, %s1454_s15  }
 0x1c0 PF: > { %s1088_s16 = sand.u32 1, %s1430_s18   ;;  %p2581_p10 = scmp.ne.s32.totalorder %s2530_s6, 0 }
 0x1c1   : > { %p2582_p0 = scmp.ge.s32.totalorder %s1442_s21, 2  ;;  %s1089_s10 = scalar_lea.sflag [#allocation5], %s1088_s16 }
 0x1c3   : > { %p1292_p2 = pnand %p2582_p0, %p2581_p10 }
 0x1c5   : > { %1425 = dma.done.wait (!%p1292_p2), %s1089_s10, 4096  }
 0x1c6   : > { %1427 = vsyncadd (!%p1292_p2), %s1089_s10, 4294963200  ;;  %p18_p4 = scmp.ge.s32.totalorder %s1510_s24, 4   ;;  %s2583_s18 = smov %s1434_s19 }
 0x1c7   : > { %s2584_s19 = smov %s1438_s20  ;;  %s2585_s20 = smov %s1522_s27 }
 0x1c8   : > { %s2586_s21 = smov %s1510_s24  ;;  %20 = sbr.rel (!%p18_p4) target bundleno = 5 (0x5), region = 106 }
 0x1cf   :  { %1094 = vsyncpa [#allocation4], 1 }
 0x1d0   :  { %1096 = vsyncpa [#allocation4 + $0x1], 1 }
 0x1d1   :  { %1097 = vsyncpa [#allocation5], 1 }
 0x1d2   :  { %1099 = vsyncpa [#allocation5 + $0x1], 1 }

</bundles_post_ra>
